<compile_context>
chip_gen: v5e
topology: v5e:2x2
jax: 0.10.0
libtpu: 0.0.40
codegen_flags: <defaults>
</compile_context>

<pallas_src>
import math
import functools

import jax
import jax.numpy as jnp
from jax.experimental import pallas as pl
from jax.experimental.pallas import tpu as pltpu


# ---------------------------------------------------------------------------
# Fused forward kernel
# ---------------------------------------------------------------------------

def _layernorm(y, gamma, beta, eps=1e-5):
    # Post-norm LayerNorm, eps=1e-5 as in PyTorch TransformerEncoderLayer.
    mu = jnp.mean(y, axis=-1, keepdims=True)
    var = jnp.mean(jnp.square(y - mu), axis=-1, keepdims=True)
    return (y - mu) * jax.lax.rsqrt(var + eps) * gamma + beta


def _fused_forward_kernel(src_ref, pe_ref, enc_w_ref, enc_b_ref,
                          dec_w_ref, dec_b_ref, *rest, nhead):
    """One grid step = one batch element; everything stays in VMEM/vregs."""
    l1_refs = rest[0:12]
    l2_refs = rest[12:24]
    emb_ref, pos_ref = rest[24], rest[25]

    f32 = jnp.float32

    # --- encoder Linear(d_model -> d_hid) + positional encoding (dropout = id) ---
    x = jnp.dot(src_ref[...], enc_w_ref[...], preferred_element_type=f32)
    x = x + enc_b_ref[...] + pe_ref[...]                     # [S, D]

    def encoder_layer(x, refs):
        (qkv_w, qkv_b, out_w, out_b,
         w1, b1, w2, b2, g1, be1, g2, be2) = refs
        S, D = x.shape
        Dh = D // nhead
        scale = 1.0 / math.sqrt(Dh)

        # --- self attention (all heads, statically unrolled; no per-head grid) ---
        qkv = jnp.dot(x, qkv_w[...], preferred_element_type=f32) + qkv_b[...]  # [S, 3D]
        ow = out_w[...]                                                         # [D, D]

        attn_proj = None
        for h in range(nhead):
            c = h * Dh
            q = qkv[:, c:c + Dh] * scale                     # pre-scale Q (cheaper than S*S)
            k = qkv[:, D + c:D + c + Dh]
            v = qkv[:, 2 * D + c:2 * D + c + Dh]
            # scores = q @ k^T  (contract last dims; MXU handles the transposed rhs)
            s = jax.lax.dot_general(q, k, (((1,), (1,)), ((), ())),
                                    preferred_element_type=f32)                 # [S, S]
            s = s - jnp.max(s, axis=-1, keepdims=True)
            p = jnp.exp(s)
            p = p * pl.reciprocal(jnp.sum(p, axis=-1, keepdims=True), approx=True)
            o_h = jnp.dot(p, v, preferred_element_type=f32)                     # [S, Dh]
            # fold the head's slice of the output projection in directly
            part = jnp.dot(o_h, ow[c:c + Dh, :], preferred_element_type=f32)    # [S, D]
            attn_proj = part if attn_proj is None else attn_proj + part
        attn_out = attn_proj + out_b[...]

        # residual + LayerNorm 1   (dropout1 = identity in eval mode)
        x1 = _layernorm(x + attn_out, g1[...], be1[...])

        # --- feed forward: relu(x1 @ W1 + b1) @ W2 + b2 ---
        hdn = jnp.maximum(jnp.dot(x1, w1[...], preferred_element_type=f32) + b1[...], 0.0)
        ff = jnp.dot(hdn, w2[...], preferred_element_type=f32) + b2[...]

        # residual + LayerNorm 2   (dropout2 = identity in eval mode)
        return _layernorm(x1 + ff, g2[...], be2[...])

    x = encoder_layer(x, l1_refs)
    x = encoder_layer(x, l2_refs)

    emb_ref[...] = x.astype(emb_ref.dtype)
    # decoder Linear(d_hid -> ntoken); ntoken=3 is lane-sparse but tiny.
    pos_ref[...] = (jnp.dot(x, dec_w_ref[...], preferred_element_type=f32)
                    + dec_b_ref[...]).astype(pos_ref.dtype)


# ---------------------------------------------------------------------------
# Wrapper: boundary layout conversion + single pallas_call
# ---------------------------------------------------------------------------

_LAYER_KEYS = ("in_proj_w", "in_proj_b", "out_proj_w", "out_proj_b",
               "w1", "b1", "w2", "b2", "ln1_g", "ln1_b", "ln2_g", "ln2_b")


def transformer_model(src, params, nhead):
    """src: [S, B, d_model] -> (outputpos [S, B, ntoken], outputemb [S, B, d_hid])."""
    S, B, d_model = src.shape
    d_hid = params["enc_w"].shape[1]
    ntoken = params["dec_w"].shape[1]

    # Batch-major 2D slab so each grid step's attention rows are contiguous.
    src2d = src.transpose(1, 0, 2).reshape(B * S, d_model)
    pe = params["pe"][:S]                                    # [S, d_hid]

    def as2d(v):
        return v.reshape(1, -1) if v.ndim == 1 else v

    inputs = [src2d, pe,
              params["enc_w"], as2d(params["enc_b"]),
              params["dec_w"], as2d(params["dec_b"])]
    for layer in ("layer1", "layer2"):
        inputs += [as2d(params[layer][k]) for k in _LAYER_KEYS]

    in_specs = [pl.BlockSpec((S, d_model), lambda b: (b, 0)),   # per-batch src rows
                pl.BlockSpec((S, d_hid), lambda b: (0, 0))]     # PE shared by all batches
    # Weights / biases: full-array blocks, constant index_map -> stay VMEM-resident.
    in_specs += [pl.BlockSpec(a.shape, lambda b: (0, 0)) for a in inputs[2:]]

    out_specs = [pl.BlockSpec((S, d_hid), lambda b: (b, 0)),
                 pl.BlockSpec((S, ntoken), lambda b: (b, 0))]
    out_shape = [jax.ShapeDtypeStruct((B * S, d_hid), src.dtype),
                 jax.ShapeDtypeStruct((B * S, ntoken), src.dtype)]

    kern = functools.partial(_fused_forward_kernel, nhead=nhead)

    # TODO(synk): for realistic sizes (large S, d_hid) this fused kernel should be
    # tiled over sequence with an online-softmax attention instead of full [S,S] scores.
    emb2d, pos2d = pl.pallas_call(
        kern,
        grid=(B,),
        in_specs=in_specs,
        out_specs=out_specs,
        out_shape=out_shape,
        compiler_params=pltpu.CompilerParams(
            dimension_semantics=("parallel",)),      # shards batch across v7x's 2 TCs
    )(*inputs)

    outputemb = emb2d.reshape(B, S, d_hid).transpose(1, 0, 2)
    outputpos = pos2d.reshape(B, S, ntoken).transpose(1, 0, 2)
    return outputpos, outputemb


# ---------------------------------------------------------------------------
# Deterministic parameter init (shapes follow torch module's __init__)
# ---------------------------------------------------------------------------

def positional_encoding(max_len, d_model):
    position = jnp.arange(max_len, dtype=jnp.float32)[:, None]
    div_term = jnp.exp(jnp.arange(0, d_model, 2, dtype=jnp.float32)
                       * (-math.log(10000.0) / d_model))
    pe = jnp.zeros((max_len, d_model), jnp.float32)
    pe = pe.at[:, 0::2].set(jnp.sin(position * div_term))
    pe = pe.at[:, 1::2].set(jnp.cos(position * div_term))
    return pe


def init_params(key, ntoken, d_model, nhead, d_hid, secd_hid, max_len=64):
    initrange = 0.1

    def u(k, shape, scale=initrange):
        return jax.random.uniform(k, shape, jnp.float32, -scale, scale)

    def layer_params(k, d, ff):
        ks = jax.random.split(k, 4)
        return dict(
            in_proj_w=u(ks[0], (d, 3 * d)),        # MHA packed QKV projection (transposed)
            in_proj_b=jnp.zeros((3 * d,), jnp.float32),
            out_proj_w=u(ks[1], (d, d)),
            out_proj_b=jnp.zeros((d,), jnp.float32),
            w1=u(ks[2], (d, ff)),                  # linear1: d -> dim_feedforward
            b1=jnp.zeros((ff,), jnp.float32),
            w2=u(ks[3], (ff, d)),                  # linear2: dim_feedforward -> d
            b2=jnp.zeros((d,), jnp.float32),
            ln1_g=jnp.ones((d,), jnp.float32),
            ln1_b=jnp.zeros((d,), jnp.float32),
            ln2_g=jnp.ones((d,), jnp.float32),
            ln2_b=jnp.zeros((d,), jnp.float32),
        )

    keys = jax.random.split(key, 4)
    return dict(
        enc_w=u(keys[0], (d_model, d_hid)),        # encoder.weight.uniform_(-0.1, 0.1)
        enc_b=jnp.zeros((d_hid,), jnp.float32),
        dec_w=u(keys[1], (d_hid, ntoken)),         # decoder.weight.uniform_(-0.1, 0.1)
        dec_b=jnp.zeros((ntoken,), jnp.float32),   # decoder.bias.zero_()
        pe=positional_encoding(max_len, d_hid),
        layer1=layer_params(keys[2], d_hid, d_hid),      # dim_feedforward = d_hid
        layer2=layer_params(keys[3], d_hid, secd_hid),   # dim_feedforward = secd_hid
    )


# ---------------------------------------------------------------------------
# Main
# ---------------------------------------------------------------------------

if __name__ == "__main__":
    key = jax.random.PRNGKey(0)

    # small shapes consistent with the module
    S, B = 8, 2                       # seq_len, batch
    ntoken, d_model = 3, 16           # 3D output dim, loci per data point
    nhead, d_hid, nlayers = 4, 32, 2
    secd_hid = 48

    params = init_params(key, ntoken, d_model, nhead, d_hid, secd_hid, max_len=64)
    src = jax.random.normal(jax.random.fold_in(key, 999), (S, B, d_model), jnp.float32)

    fwd = jax.jit(functools.partial(transformer_model, nhead=nhead))
    outputpos, outputemb = fwd(src, params)
    jax.block_until_ready((outputpos, outputemb))

    assert outputpos.shape == (S, B, ntoken), outputpos.shape
    assert outputemb.shape == (S, B, d_hid), outputemb.shape
    assert jnp.all(jnp.isfinite(outputpos)) and jnp.all(jnp.isfinite(outputemb))

    print("KERNEL_OK")
</pallas_src>

<mosaic_0001>
module attributes {stable_mosaic.version = 11 : i64} {
  func.func @_fused_forward_kernel(%arg0: i32, %arg1: memref<8x16xf32, #tpu.memory_space<vmem>>, %arg2: memref<8x32xf32, #tpu.memory_space<vmem>>, %arg3: memref<16x32xf32, #tpu.memory_space<vmem>>, %arg4: memref<1x32xf32, #tpu.memory_space<vmem>>, %arg5: memref<32x3xf32, #tpu.memory_space<vmem>>, %arg6: memref<1x3xf32, #tpu.memory_space<vmem>>, %arg7: memref<32x96xf32, #tpu.memory_space<vmem>>, %arg8: memref<1x96xf32, #tpu.memory_space<vmem>>, %arg9: memref<32x32xf32, #tpu.memory_space<vmem>>, %arg10: memref<1x32xf32, #tpu.memory_space<vmem>>, %arg11: memref<32x32xf32, #tpu.memory_space<vmem>>, %arg12: memref<1x32xf32, #tpu.memory_space<vmem>>, %arg13: memref<32x32xf32, #tpu.memory_space<vmem>>, %arg14: memref<1x32xf32, #tpu.memory_space<vmem>>, %arg15: memref<1x32xf32, #tpu.memory_space<vmem>>, %arg16: memref<1x32xf32, #tpu.memory_space<vmem>>, %arg17: memref<1x32xf32, #tpu.memory_space<vmem>>, %arg18: memref<1x32xf32, #tpu.memory_space<vmem>>, %arg19: memref<32x96xf32, #tpu.memory_space<vmem>>, %arg20: memref<1x96xf32, #tpu.memory_space<vmem>>, %arg21: memref<32x32xf32, #tpu.memory_space<vmem>>, %arg22: memref<1x32xf32, #tpu.memory_space<vmem>>, %arg23: memref<32x48xf32, #tpu.memory_space<vmem>>, %arg24: memref<1x48xf32, #tpu.memory_space<vmem>>, %arg25: memref<48x32xf32, #tpu.memory_space<vmem>>, %arg26: memref<1x32xf32, #tpu.memory_space<vmem>>, %arg27: memref<1x32xf32, #tpu.memory_space<vmem>>, %arg28: memref<1x32xf32, #tpu.memory_space<vmem>>, %arg29: memref<1x32xf32, #tpu.memory_space<vmem>>, %arg30: memref<1x32xf32, #tpu.memory_space<vmem>>, %arg31: memref<8x32xf32, #tpu.memory_space<vmem>>, %arg32: memref<8x3xf32, #tpu.memory_space<vmem>>) attributes {dimension_semantics = [#tpu.dimension_semantics<parallel>], iteration_bounds = array<i64: 2>, scalar_prefetch = 0 : i64, scratch_operands = 0 : i64, tpu.core_type = #tpu.core_type<tc>, window_params = [{transform_indices = @transform_0, window_bounds = array<i64: 8, 16>}, {pipeline_mode = #tpu.pipeline_mode<synchronous>, transform_indices = @transform_1, window_bounds = array<i64: 8, 32>}, {pipeline_mode = #tpu.pipeline_mode<synchronous>, transform_indices = @transform_2, window_bounds = array<i64: 16, 32>}, {pipeline_mode = #tpu.pipeline_mode<synchronous>, transform_indices = @transform_3, window_bounds = array<i64: 1, 32>}, {pipeline_mode = #tpu.pipeline_mode<synchronous>, transform_indices = @transform_4, window_bounds = array<i64: 32, 3>}, {pipeline_mode = #tpu.pipeline_mode<synchronous>, transform_indices = @transform_5, window_bounds = array<i64: 1, 3>}, {pipeline_mode = #tpu.pipeline_mode<synchronous>, transform_indices = @transform_6, window_bounds = array<i64: 32, 96>}, {pipeline_mode = #tpu.pipeline_mode<synchronous>, transform_indices = @transform_7, window_bounds = array<i64: 1, 96>}, {pipeline_mode = #tpu.pipeline_mode<synchronous>, transform_indices = @transform_8, window_bounds = array<i64: 32, 32>}, {pipeline_mode = #tpu.pipeline_mode<synchronous>, transform_indices = @transform_9, window_bounds = array<i64: 1, 32>}, {pipeline_mode = #tpu.pipeline_mode<synchronous>, transform_indices = @transform_10, window_bounds = array<i64: 32, 32>}, {pipeline_mode = #tpu.pipeline_mode<synchronous>, transform_indices = @transform_11, window_bounds = array<i64: 1, 32>}, {pipeline_mode = #tpu.pipeline_mode<synchronous>, transform_indices = @transform_12, window_bounds = array<i64: 32, 32>}, {pipeline_mode = #tpu.pipeline_mode<synchronous>, transform_indices = @transform_13, window_bounds = array<i64: 1, 32>}, {pipeline_mode = #tpu.pipeline_mode<synchronous>, transform_indices = @transform_14, window_bounds = array<i64: 1, 32>}, {pipeline_mode = #tpu.pipeline_mode<synchronous>, transform_indices = @transform_15, window_bounds = array<i64: 1, 32>}, {pipeline_mode = #tpu.pipeline_mode<synchronous>, transform_indices = @transform_16, window_bounds = array<i64: 1, 32>}, {pipeline_mode = #tpu.pipeline_mode<synchronous>, transform_indices = @transform_17, window_bounds = array<i64: 1, 32>}, {pipeline_mode = #tpu.pipeline_mode<synchronous>, transform_indices = @transform_18, window_bounds = array<i64: 32, 96>}, {pipeline_mode = #tpu.pipeline_mode<synchronous>, transform_indices = @transform_19, window_bounds = array<i64: 1, 96>}, {pipeline_mode = #tpu.pipeline_mode<synchronous>, transform_indices = @transform_20, window_bounds = array<i64: 32, 32>}, {pipeline_mode = #tpu.pipeline_mode<synchronous>, transform_indices = @transform_21, window_bounds = array<i64: 1, 32>}, {pipeline_mode = #tpu.pipeline_mode<synchronous>, transform_indices = @transform_22, window_bounds = array<i64: 32, 48>}, {pipeline_mode = #tpu.pipeline_mode<synchronous>, transform_indices = @transform_23, window_bounds = array<i64: 1, 48>}, {pipeline_mode = #tpu.pipeline_mode<synchronous>, transform_indices = @transform_24, window_bounds = array<i64: 48, 32>}, {pipeline_mode = #tpu.pipeline_mode<synchronous>, transform_indices = @transform_25, window_bounds = array<i64: 1, 32>}, {pipeline_mode = #tpu.pipeline_mode<synchronous>, transform_indices = @transform_26, window_bounds = array<i64: 1, 32>}, {pipeline_mode = #tpu.pipeline_mode<synchronous>, transform_indices = @transform_27, window_bounds = array<i64: 1, 32>}, {pipeline_mode = #tpu.pipeline_mode<synchronous>, transform_indices = @transform_28, window_bounds = array<i64: 1, 32>}, {pipeline_mode = #tpu.pipeline_mode<synchronous>, transform_indices = @transform_29, window_bounds = array<i64: 1, 32>}, {transform_indices = @transform_30, window_bounds = array<i64: 8, 32>}, {transform_indices = @transform_31, window_bounds = array<i64: 8, 3>}]} {
    %c0 = arith.constant 0 : index
    %c0_0 = arith.constant 0 : index
    %0 = vector.load %arg1[%c0, %c0_0] : memref<8x16xf32, #tpu.memory_space<vmem>>, vector<8x16xf32>
    %c0_1 = arith.constant 0 : index
    %c0_2 = arith.constant 0 : index
    %1 = vector.load %arg3[%c0_1, %c0_2] : memref<16x32xf32, #tpu.memory_space<vmem>>, vector<16x32xf32>
    %cst = arith.constant dense<0.000000e+00> : vector<8x32xf32>
    %2 = tpu.matmul %0, %1, %cst {dimension_numbers = #tpu.dot_dimension_numbers<[1], [0], [0], [1], [0, 0, 1, 1], [], []>} : vector<8x16xf32>, vector<16x32xf32>, vector<8x32xf32> -> vector<8x32xf32>
    %c0_3 = arith.constant 0 : index
    %c0_4 = arith.constant 0 : index
    %3 = vector.load %arg4[%c0_3, %c0_4] : memref<1x32xf32, #tpu.memory_space<vmem>>, vector<1x32xf32>
    %4 = vector.broadcast %3 : vector<1x32xf32> to vector<8x32xf32>
    %5 = arith.addf %2, %4 : vector<8x32xf32>
    %c0_5 = arith.constant 0 : index
    %c0_6 = arith.constant 0 : index
    %6 = vector.load %arg2[%c0_5, %c0_6] : memref<8x32xf32, #tpu.memory_space<vmem>>, vector<8x32xf32>
    %7 = arith.addf %5, %6 : vector<8x32xf32>
    %c0_7 = arith.constant 0 : index
    %c0_8 = arith.constant 0 : index
    %8 = vector.load %arg7[%c0_7, %c0_8] : memref<32x96xf32, #tpu.memory_space<vmem>>, vector<32x96xf32>
    %cst_9 = arith.constant dense<0.000000e+00> : vector<8x96xf32>
    %9 = tpu.matmul %7, %8, %cst_9 {dimension_numbers = #tpu.dot_dimension_numbers<[1], [0], [0], [1], [0, 0, 1, 1], [], []>} : vector<8x32xf32>, vector<32x96xf32>, vector<8x96xf32> -> vector<8x96xf32>
    %c0_10 = arith.constant 0 : index
    %c0_11 = arith.constant 0 : index
    %10 = vector.load %arg8[%c0_10, %c0_11] : memref<1x96xf32, #tpu.memory_space<vmem>>, vector<1x96xf32>
    %11 = vector.broadcast %10 : vector<1x96xf32> to vector<8x96xf32>
    %12 = arith.addf %9, %11 : vector<8x96xf32>
    %c0_12 = arith.constant 0 : index
    %c0_13 = arith.constant 0 : index
    %13 = vector.load %arg9[%c0_12, %c0_13] : memref<32x32xf32, #tpu.memory_space<vmem>>, vector<32x32xf32>
    %14 = vector.extract_strided_slice %12 {offsets = [0, 0], sizes = [8, 8], strides = [1, 1]} : vector<8x96xf32> to vector<8x8xf32>
    %cst_14 = arith.constant 0.353553385 : f32
    %15 = vector.broadcast %cst_14 : f32 to vector<8x8xf32>
    %16 = arith.mulf %14, %15 : vector<8x8xf32>
    %17 = vector.extract_strided_slice %12 {offsets = [0, 32], sizes = [8, 8], strides = [1, 1]} : vector<8x96xf32> to vector<8x8xf32>
    %18 = vector.extract_strided_slice %12 {offsets = [0, 64], sizes = [8, 8], strides = [1, 1]} : vector<8x96xf32> to vector<8x8xf32>
    %cst_15 = arith.constant dense<0.000000e+00> : vector<8x8xf32>
    %19 = tpu.matmul %16, %17, %cst_15 {dimension_numbers = #tpu.dot_dimension_numbers<[1], [1], [0], [0], [0, 0, 1, 0], [], []>} : vector<8x8xf32>, vector<8x8xf32>, vector<8x8xf32> -> vector<8x8xf32>
    %cst_16 = arith.constant dense<0xFF800000> : vector<8xf32>
    %20 = vector.multi_reduction <maximumf>, %19, %cst_16 [1] : vector<8x8xf32> to vector<8xf32>
    %21 = vector.shape_cast %20 : vector<8xf32> to vector<8x1xf32>
    %22 = vector.broadcast %21 : vector<8x1xf32> to vector<8x8xf32>
    %23 = arith.subf %19, %22 : vector<8x8xf32>
    %24 = math.exp %23 : vector<8x8xf32>
    %cst_17 = arith.constant dense<0.000000e+00> : vector<8xf32>
    %25 = vector.multi_reduction <add>, %24, %cst_17 [1] : vector<8x8xf32> to vector<8xf32>
    %26 = vector.shape_cast %25 : vector<8xf32> to vector<8x1xf32>
    %27 = tpu.reciprocal %26 {approx = true} : vector<8x1xf32> -> vector<8x1xf32>
    %28 = vector.broadcast %27 : vector<8x1xf32> to vector<8x8xf32>
    %29 = arith.mulf %24, %28 : vector<8x8xf32>
    %cst_18 = arith.constant dense<0.000000e+00> : vector<8x8xf32>
    %30 = tpu.matmul %29, %18, %cst_18 {dimension_numbers = #tpu.dot_dimension_numbers<[1], [0], [0], [1], [0, 0, 1, 1], [], []>} : vector<8x8xf32>, vector<8x8xf32>, vector<8x8xf32> -> vector<8x8xf32>
    %31 = vector.extract_strided_slice %13 {offsets = [0, 0], sizes = [8, 32], strides = [1, 1]} : vector<32x32xf32> to vector<8x32xf32>
    %cst_19 = arith.constant dense<0.000000e+00> : vector<8x32xf32>
    %32 = tpu.matmul %30, %31, %cst_19 {dimension_numbers = #tpu.dot_dimension_numbers<[1], [0], [0], [1], [0, 0, 1, 1], [], []>} : vector<8x8xf32>, vector<8x32xf32>, vector<8x32xf32> -> vector<8x32xf32>
    %33 = vector.extract_strided_slice %12 {offsets = [0, 8], sizes = [8, 8], strides = [1, 1]} : vector<8x96xf32> to vector<8x8xf32>
    %cst_20 = arith.constant 0.353553385 : f32
    %34 = vector.broadcast %cst_20 : f32 to vector<8x8xf32>
    %35 = arith.mulf %33, %34 : vector<8x8xf32>
    %36 = vector.extract_strided_slice %12 {offsets = [0, 40], sizes = [8, 8], strides = [1, 1]} : vector<8x96xf32> to vector<8x8xf32>
    %37 = vector.extract_strided_slice %12 {offsets = [0, 72], sizes = [8, 8], strides = [1, 1]} : vector<8x96xf32> to vector<8x8xf32>
    %cst_21 = arith.constant dense<0.000000e+00> : vector<8x8xf32>
    %38 = tpu.matmul %35, %36, %cst_21 {dimension_numbers = #tpu.dot_dimension_numbers<[1], [1], [0], [0], [0, 0, 1, 0], [], []>} : vector<8x8xf32>, vector<8x8xf32>, vector<8x8xf32> -> vector<8x8xf32>
    %cst_22 = arith.constant dense<0xFF800000> : vector<8xf32>
    %39 = vector.multi_reduction <maximumf>, %38, %cst_22 [1] : vector<8x8xf32> to vector<8xf32>
    %40 = vector.shape_cast %39 : vector<8xf32> to vector<8x1xf32>
    %41 = vector.broadcast %40 : vector<8x1xf32> to vector<8x8xf32>
    %42 = arith.subf %38, %41 : vector<8x8xf32>
    %43 = math.exp %42 : vector<8x8xf32>
    %cst_23 = arith.constant dense<0.000000e+00> : vector<8xf32>
    %44 = vector.multi_reduction <add>, %43, %cst_23 [1] : vector<8x8xf32> to vector<8xf32>
    %45 = vector.shape_cast %44 : vector<8xf32> to vector<8x1xf32>
    %46 = tpu.reciprocal %45 {approx = true} : vector<8x1xf32> -> vector<8x1xf32>
    %47 = vector.broadcast %46 : vector<8x1xf32> to vector<8x8xf32>
    %48 = arith.mulf %43, %47 : vector<8x8xf32>
    %cst_24 = arith.constant dense<0.000000e+00> : vector<8x8xf32>
    %49 = tpu.matmul %48, %37, %cst_24 {dimension_numbers = #tpu.dot_dimension_numbers<[1], [0], [0], [1], [0, 0, 1, 1], [], []>} : vector<8x8xf32>, vector<8x8xf32>, vector<8x8xf32> -> vector<8x8xf32>
    %50 = vector.extract_strided_slice %13 {offsets = [8, 0], sizes = [8, 32], strides = [1, 1]} : vector<32x32xf32> to vector<8x32xf32>
    %cst_25 = arith.constant dense<0.000000e+00> : vector<8x32xf32>
    %51 = tpu.matmul %49, %50, %cst_25 {dimension_numbers = #tpu.dot_dimension_numbers<[1], [0], [0], [1], [0, 0, 1, 1], [], []>} : vector<8x8xf32>, vector<8x32xf32>, vector<8x32xf32> -> vector<8x32xf32>
    %52 = arith.addf %32, %51 : vector<8x32xf32>
    %53 = vector.extract_strided_slice %12 {offsets = [0, 16], sizes = [8, 8], strides = [1, 1]} : vector<8x96xf32> to vector<8x8xf32>
    %cst_26 = arith.constant 0.353553385 : f32
    %54 = vector.broadcast %cst_26 : f32 to vector<8x8xf32>
    %55 = arith.mulf %53, %54 : vector<8x8xf32>
    %56 = vector.extract_strided_slice %12 {offsets = [0, 48], sizes = [8, 8], strides = [1, 1]} : vector<8x96xf32> to vector<8x8xf32>
    %57 = vector.extract_strided_slice %12 {offsets = [0, 80], sizes = [8, 8], strides = [1, 1]} : vector<8x96xf32> to vector<8x8xf32>
    %cst_27 = arith.constant dense<0.000000e+00> : vector<8x8xf32>
    %58 = tpu.matmul %55, %56, %cst_27 {dimension_numbers = #tpu.dot_dimension_numbers<[1], [1], [0], [0], [0, 0, 1, 0], [], []>} : vector<8x8xf32>, vector<8x8xf32>, vector<8x8xf32> -> vector<8x8xf32>
    %cst_28 = arith.constant dense<0xFF800000> : vector<8xf32>
    %59 = vector.multi_reduction <maximumf>, %58, %cst_28 [1] : vector<8x8xf32> to vector<8xf32>
    %60 = vector.shape_cast %59 : vector<8xf32> to vector<8x1xf32>
    %61 = vector.broadcast %60 : vector<8x1xf32> to vector<8x8xf32>
    %62 = arith.subf %58, %61 : vector<8x8xf32>
    %63 = math.exp %62 : vector<8x8xf32>
    %cst_29 = arith.constant dense<0.000000e+00> : vector<8xf32>
    %64 = vector.multi_reduction <add>, %63, %cst_29 [1] : vector<8x8xf32> to vector<8xf32>
    %65 = vector.shape_cast %64 : vector<8xf32> to vector<8x1xf32>
    %66 = tpu.reciprocal %65 {approx = true} : vector<8x1xf32> -> vector<8x1xf32>
    %67 = vector.broadcast %66 : vector<8x1xf32> to vector<8x8xf32>
    %68 = arith.mulf %63, %67 : vector<8x8xf32>
    %cst_30 = arith.constant dense<0.000000e+00> : vector<8x8xf32>
    %69 = tpu.matmul %68, %57, %cst_30 {dimension_numbers = #tpu.dot_dimension_numbers<[1], [0], [0], [1], [0, 0, 1, 1], [], []>} : vector<8x8xf32>, vector<8x8xf32>, vector<8x8xf32> -> vector<8x8xf32>
    %70 = vector.extract_strided_slice %13 {offsets = [16, 0], sizes = [8, 32], strides = [1, 1]} : vector<32x32xf32> to vector<8x32xf32>
    %cst_31 = arith.constant dense<0.000000e+00> : vector<8x32xf32>
    %71 = tpu.matmul %69, %70, %cst_31 {dimension_numbers = #tpu.dot_dimension_numbers<[1], [0], [0], [1], [0, 0, 1, 1], [], []>} : vector<8x8xf32>, vector<8x32xf32>, vector<8x32xf32> -> vector<8x32xf32>
    %72 = arith.addf %52, %71 : vector<8x32xf32>
    %73 = vector.extract_strided_slice %12 {offsets = [0, 24], sizes = [8, 8], strides = [1, 1]} : vector<8x96xf32> to vector<8x8xf32>
    %cst_32 = arith.constant 0.353553385 : f32
    %74 = vector.broadcast %cst_32 : f32 to vector<8x8xf32>
    %75 = arith.mulf %73, %74 : vector<8x8xf32>
    %76 = vector.extract_strided_slice %12 {offsets = [0, 56], sizes = [8, 8], strides = [1, 1]} : vector<8x96xf32> to vector<8x8xf32>
    %77 = vector.extract_strided_slice %12 {offsets = [0, 88], sizes = [8, 8], strides = [1, 1]} : vector<8x96xf32> to vector<8x8xf32>
    %cst_33 = arith.constant dense<0.000000e+00> : vector<8x8xf32>
    %78 = tpu.matmul %75, %76, %cst_33 {dimension_numbers = #tpu.dot_dimension_numbers<[1], [1], [0], [0], [0, 0, 1, 0], [], []>} : vector<8x8xf32>, vector<8x8xf32>, vector<8x8xf32> -> vector<8x8xf32>
    %cst_34 = arith.constant dense<0xFF800000> : vector<8xf32>
    %79 = vector.multi_reduction <maximumf>, %78, %cst_34 [1] : vector<8x8xf32> to vector<8xf32>
    %80 = vector.shape_cast %79 : vector<8xf32> to vector<8x1xf32>
    %81 = vector.broadcast %80 : vector<8x1xf32> to vector<8x8xf32>
    %82 = arith.subf %78, %81 : vector<8x8xf32>
    %83 = math.exp %82 : vector<8x8xf32>
    %cst_35 = arith.constant dense<0.000000e+00> : vector<8xf32>
    %84 = vector.multi_reduction <add>, %83, %cst_35 [1] : vector<8x8xf32> to vector<8xf32>
    %85 = vector.shape_cast %84 : vector<8xf32> to vector<8x1xf32>
    %86 = tpu.reciprocal %85 {approx = true} : vector<8x1xf32> -> vector<8x1xf32>
    %87 = vector.broadcast %86 : vector<8x1xf32> to vector<8x8xf32>
    %88 = arith.mulf %83, %87 : vector<8x8xf32>
    %cst_36 = arith.constant dense<0.000000e+00> : vector<8x8xf32>
    %89 = tpu.matmul %88, %77, %cst_36 {dimension_numbers = #tpu.dot_dimension_numbers<[1], [0], [0], [1], [0, 0, 1, 1], [], []>} : vector<8x8xf32>, vector<8x8xf32>, vector<8x8xf32> -> vector<8x8xf32>
    %90 = vector.extract_strided_slice %13 {offsets = [24, 0], sizes = [8, 32], strides = [1, 1]} : vector<32x32xf32> to vector<8x32xf32>
    %cst_37 = arith.constant dense<0.000000e+00> : vector<8x32xf32>
    %91 = tpu.matmul %89, %90, %cst_37 {dimension_numbers = #tpu.dot_dimension_numbers<[1], [0], [0], [1], [0, 0, 1, 1], [], []>} : vector<8x8xf32>, vector<8x32xf32>, vector<8x32xf32> -> vector<8x32xf32>
    %92 = arith.addf %72, %91 : vector<8x32xf32>
    %c0_38 = arith.constant 0 : index
    %c0_39 = arith.constant 0 : index
    %93 = vector.load %arg10[%c0_38, %c0_39] : memref<1x32xf32, #tpu.memory_space<vmem>>, vector<1x32xf32>
    %94 = vector.broadcast %93 : vector<1x32xf32> to vector<8x32xf32>
    %95 = arith.addf %92, %94 : vector<8x32xf32>
    %96 = arith.addf %7, %95 : vector<8x32xf32>
    %c0_40 = arith.constant 0 : index
    %c0_41 = arith.constant 0 : index
    %97 = vector.load %arg15[%c0_40, %c0_41] : memref<1x32xf32, #tpu.memory_space<vmem>>, vector<1x32xf32>
    %c0_42 = arith.constant 0 : index
    %c0_43 = arith.constant 0 : index
    %98 = vector.load %arg16[%c0_42, %c0_43] : memref<1x32xf32, #tpu.memory_space<vmem>>, vector<1x32xf32>
    %cst_44 = arith.constant dense<0.000000e+00> : vector<8xf32>
    %99 = vector.multi_reduction <add>, %96, %cst_44 [1] : vector<8x32xf32> to vector<8xf32>
    %100 = vector.shape_cast %99 : vector<8xf32> to vector<8x1xf32>
    %cst_45 = arith.constant 3.200000e+01 : f32
    %101 = vector.broadcast %cst_45 : f32 to vector<8x1xf32>
    %102 = arith.divf %100, %101 : vector<8x1xf32>
    %103 = vector.broadcast %102 : vector<8x1xf32> to vector<8x32xf32>
    %104 = arith.subf %96, %103 : vector<8x32xf32>
    %105 = arith.mulf %104, %104 : vector<8x32xf32>
    %cst_46 = arith.constant dense<0.000000e+00> : vector<8xf32>
    %106 = vector.multi_reduction <add>, %105, %cst_46 [1] : vector<8x32xf32> to vector<8xf32>
    %107 = vector.shape_cast %106 : vector<8xf32> to vector<8x1xf32>
    %cst_47 = arith.constant 3.200000e+01 : f32
    %108 = vector.broadcast %cst_47 : f32 to vector<8x1xf32>
    %109 = arith.divf %107, %108 : vector<8x1xf32>
    %110 = vector.broadcast %102 : vector<8x1xf32> to vector<8x32xf32>
    %111 = arith.subf %96, %110 : vector<8x32xf32>
    %cst_48 = arith.constant 9.99999974E-6 : f32
    %112 = vector.broadcast %cst_48 : f32 to vector<8x1xf32>
    %113 = arith.addf %109, %112 : vector<8x1xf32>
    %114 = math.rsqrt %113 : vector<8x1xf32>
    %115 = vector.broadcast %114 : vector<8x1xf32> to vector<8x32xf32>
    %116 = arith.mulf %111, %115 : vector<8x32xf32>
    %117 = vector.broadcast %97 : vector<1x32xf32> to vector<8x32xf32>
    %118 = arith.mulf %116, %117 : vector<8x32xf32>
    %119 = vector.broadcast %98 : vector<1x32xf32> to vector<8x32xf32>
    %120 = arith.addf %118, %119 : vector<8x32xf32>
    %c0_49 = arith.constant 0 : index
    %c0_50 = arith.constant 0 : index
    %121 = vector.load %arg11[%c0_49, %c0_50] : memref<32x32xf32, #tpu.memory_space<vmem>>, vector<32x32xf32>
    %cst_51 = arith.constant dense<0.000000e+00> : vector<8x32xf32>
    %122 = tpu.matmul %120, %121, %cst_51 {dimension_numbers = #tpu.dot_dimension_numbers<[1], [0], [0], [1], [0, 0, 1, 1], [], []>} : vector<8x32xf32>, vector<32x32xf32>, vector<8x32xf32> -> vector<8x32xf32>
    %c0_52 = arith.constant 0 : index
    %c0_53 = arith.constant 0 : index
    %123 = vector.load %arg12[%c0_52, %c0_53] : memref<1x32xf32, #tpu.memory_space<vmem>>, vector<1x32xf32>
    %124 = vector.broadcast %123 : vector<1x32xf32> to vector<8x32xf32>
    %125 = arith.addf %122, %124 : vector<8x32xf32>
    %cst_54 = arith.constant 0.000000e+00 : f32
    %126 = vector.broadcast %cst_54 : f32 to vector<8x32xf32>
    %127 = arith.maximumf %125, %126 : vector<8x32xf32>
    %c0_55 = arith.constant 0 : index
    %c0_56 = arith.constant 0 : index
    %128 = vector.load %arg13[%c0_55, %c0_56] : memref<32x32xf32, #tpu.memory_space<vmem>>, vector<32x32xf32>
    %cst_57 = arith.constant dense<0.000000e+00> : vector<8x32xf32>
    %129 = tpu.matmul %127, %128, %cst_57 {dimension_numbers = #tpu.dot_dimension_numbers<[1], [0], [0], [1], [0, 0, 1, 1], [], []>} : vector<8x32xf32>, vector<32x32xf32>, vector<8x32xf32> -> vector<8x32xf32>
    %c0_58 = arith.constant 0 : index
    %c0_59 = arith.constant 0 : index
    %130 = vector.load %arg14[%c0_58, %c0_59] : memref<1x32xf32, #tpu.memory_space<vmem>>, vector<1x32xf32>
    %131 = vector.broadcast %130 : vector<1x32xf32> to vector<8x32xf32>
    %132 = arith.addf %129, %131 : vector<8x32xf32>
    %133 = arith.addf %120, %132 : vector<8x32xf32>
    %c0_60 = arith.constant 0 : index
    %c0_61 = arith.constant 0 : index
    %134 = vector.load %arg17[%c0_60, %c0_61] : memref<1x32xf32, #tpu.memory_space<vmem>>, vector<1x32xf32>
    %c0_62 = arith.constant 0 : index
    %c0_63 = arith.constant 0 : index
    %135 = vector.load %arg18[%c0_62, %c0_63] : memref<1x32xf32, #tpu.memory_space<vmem>>, vector<1x32xf32>
    %cst_64 = arith.constant dense<0.000000e+00> : vector<8xf32>
    %136 = vector.multi_reduction <add>, %133, %cst_64 [1] : vector<8x32xf32> to vector<8xf32>
    %137 = vector.shape_cast %136 : vector<8xf32> to vector<8x1xf32>
    %cst_65 = arith.constant 3.200000e+01 : f32
    %138 = vector.broadcast %cst_65 : f32 to vector<8x1xf32>
    %139 = arith.divf %137, %138 : vector<8x1xf32>
    %140 = vector.broadcast %139 : vector<8x1xf32> to vector<8x32xf32>
    %141 = arith.subf %133, %140 : vector<8x32xf32>
    %142 = arith.mulf %141, %141 : vector<8x32xf32>
    %cst_66 = arith.constant dense<0.000000e+00> : vector<8xf32>
    %143 = vector.multi_reduction <add>, %142, %cst_66 [1] : vector<8x32xf32> to vector<8xf32>
    %144 = vector.shape_cast %143 : vector<8xf32> to vector<8x1xf32>
    %cst_67 = arith.constant 3.200000e+01 : f32
    %145 = vector.broadcast %cst_67 : f32 to vector<8x1xf32>
    %146 = arith.divf %144, %145 : vector<8x1xf32>
    %147 = vector.broadcast %139 : vector<8x1xf32> to vector<8x32xf32>
    %148 = arith.subf %133, %147 : vector<8x32xf32>
    %cst_68 = arith.constant 9.99999974E-6 : f32
    %149 = vector.broadcast %cst_68 : f32 to vector<8x1xf32>
    %150 = arith.addf %146, %149 : vector<8x1xf32>
    %151 = math.rsqrt %150 : vector<8x1xf32>
    %152 = vector.broadcast %151 : vector<8x1xf32> to vector<8x32xf32>
    %153 = arith.mulf %148, %152 : vector<8x32xf32>
    %154 = vector.broadcast %134 : vector<1x32xf32> to vector<8x32xf32>
    %155 = arith.mulf %153, %154 : vector<8x32xf32>
    %156 = vector.broadcast %135 : vector<1x32xf32> to vector<8x32xf32>
    %157 = arith.addf %155, %156 : vector<8x32xf32>
    %c0_69 = arith.constant 0 : index
    %c0_70 = arith.constant 0 : index
    %158 = vector.load %arg19[%c0_69, %c0_70] : memref<32x96xf32, #tpu.memory_space<vmem>>, vector<32x96xf32>
    %cst_71 = arith.constant dense<0.000000e+00> : vector<8x96xf32>
    %159 = tpu.matmul %157, %158, %cst_71 {dimension_numbers = #tpu.dot_dimension_numbers<[1], [0], [0], [1], [0, 0, 1, 1], [], []>} : vector<8x32xf32>, vector<32x96xf32>, vector<8x96xf32> -> vector<8x96xf32>
    %c0_72 = arith.constant 0 : index
    %c0_73 = arith.constant 0 : index
    %160 = vector.load %arg20[%c0_72, %c0_73] : memref<1x96xf32, #tpu.memory_space<vmem>>, vector<1x96xf32>
    %161 = vector.broadcast %160 : vector<1x96xf32> to vector<8x96xf32>
    %162 = arith.addf %159, %161 : vector<8x96xf32>
    %c0_74 = arith.constant 0 : index
    %c0_75 = arith.constant 0 : index
    %163 = vector.load %arg21[%c0_74, %c0_75] : memref<32x32xf32, #tpu.memory_space<vmem>>, vector<32x32xf32>
    %164 = vector.extract_strided_slice %162 {offsets = [0, 0], sizes = [8, 8], strides = [1, 1]} : vector<8x96xf32> to vector<8x8xf32>
    %cst_76 = arith.constant 0.353553385 : f32
    %165 = vector.broadcast %cst_76 : f32 to vector<8x8xf32>
    %166 = arith.mulf %164, %165 : vector<8x8xf32>
    %167 = vector.extract_strided_slice %162 {offsets = [0, 32], sizes = [8, 8], strides = [1, 1]} : vector<8x96xf32> to vector<8x8xf32>
    %168 = vector.extract_strided_slice %162 {offsets = [0, 64], sizes = [8, 8], strides = [1, 1]} : vector<8x96xf32> to vector<8x8xf32>
    %cst_77 = arith.constant dense<0.000000e+00> : vector<8x8xf32>
    %169 = tpu.matmul %166, %167, %cst_77 {dimension_numbers = #tpu.dot_dimension_numbers<[1], [1], [0], [0], [0, 0, 1, 0], [], []>} : vector<8x8xf32>, vector<8x8xf32>, vector<8x8xf32> -> vector<8x8xf32>
    %cst_78 = arith.constant dense<0xFF800000> : vector<8xf32>
    %170 = vector.multi_reduction <maximumf>, %169, %cst_78 [1] : vector<8x8xf32> to vector<8xf32>
    %171 = vector.shape_cast %170 : vector<8xf32> to vector<8x1xf32>
    %172 = vector.broadcast %171 : vector<8x1xf32> to vector<8x8xf32>
    %173 = arith.subf %169, %172 : vector<8x8xf32>
    %174 = math.exp %173 : vector<8x8xf32>
    %cst_79 = arith.constant dense<0.000000e+00> : vector<8xf32>
    %175 = vector.multi_reduction <add>, %174, %cst_79 [1] : vector<8x8xf32> to vector<8xf32>
    %176 = vector.shape_cast %175 : vector<8xf32> to vector<8x1xf32>
    %177 = tpu.reciprocal %176 {approx = true} : vector<8x1xf32> -> vector<8x1xf32>
    %178 = vector.broadcast %177 : vector<8x1xf32> to vector<8x8xf32>
    %179 = arith.mulf %174, %178 : vector<8x8xf32>
    %cst_80 = arith.constant dense<0.000000e+00> : vector<8x8xf32>
    %180 = tpu.matmul %179, %168, %cst_80 {dimension_numbers = #tpu.dot_dimension_numbers<[1], [0], [0], [1], [0, 0, 1, 1], [], []>} : vector<8x8xf32>, vector<8x8xf32>, vector<8x8xf32> -> vector<8x8xf32>
    %181 = vector.extract_strided_slice %163 {offsets = [0, 0], sizes = [8, 32], strides = [1, 1]} : vector<32x32xf32> to vector<8x32xf32>
    %cst_81 = arith.constant dense<0.000000e+00> : vector<8x32xf32>
    %182 = tpu.matmul %180, %181, %cst_81 {dimension_numbers = #tpu.dot_dimension_numbers<[1], [0], [0], [1], [0, 0, 1, 1], [], []>} : vector<8x8xf32>, vector<8x32xf32>, vector<8x32xf32> -> vector<8x32xf32>
    %183 = vector.extract_strided_slice %162 {offsets = [0, 8], sizes = [8, 8], strides = [1, 1]} : vector<8x96xf32> to vector<8x8xf32>
    %cst_82 = arith.constant 0.353553385 : f32
    %184 = vector.broadcast %cst_82 : f32 to vector<8x8xf32>
    %185 = arith.mulf %183, %184 : vector<8x8xf32>
    %186 = vector.extract_strided_slice %162 {offsets = [0, 40], sizes = [8, 8], strides = [1, 1]} : vector<8x96xf32> to vector<8x8xf32>
    %187 = vector.extract_strided_slice %162 {offsets = [0, 72], sizes = [8, 8], strides = [1, 1]} : vector<8x96xf32> to vector<8x8xf32>
    %cst_83 = arith.constant dense<0.000000e+00> : vector<8x8xf32>
    %188 = tpu.matmul %185, %186, %cst_83 {dimension_numbers = #tpu.dot_dimension_numbers<[1], [1], [0], [0], [0, 0, 1, 0], [], []>} : vector<8x8xf32>, vector<8x8xf32>, vector<8x8xf32> -> vector<8x8xf32>
    %cst_84 = arith.constant dense<0xFF800000> : vector<8xf32>
    %189 = vector.multi_reduction <maximumf>, %188, %cst_84 [1] : vector<8x8xf32> to vector<8xf32>
    %190 = vector.shape_cast %189 : vector<8xf32> to vector<8x1xf32>
    %191 = vector.broadcast %190 : vector<8x1xf32> to vector<8x8xf32>
    %192 = arith.subf %188, %191 : vector<8x8xf32>
    %193 = math.exp %192 : vector<8x8xf32>
    %cst_85 = arith.constant dense<0.000000e+00> : vector<8xf32>
    %194 = vector.multi_reduction <add>, %193, %cst_85 [1] : vector<8x8xf32> to vector<8xf32>
    %195 = vector.shape_cast %194 : vector<8xf32> to vector<8x1xf32>
    %196 = tpu.reciprocal %195 {approx = true} : vector<8x1xf32> -> vector<8x1xf32>
    %197 = vector.broadcast %196 : vector<8x1xf32> to vector<8x8xf32>
    %198 = arith.mulf %193, %197 : vector<8x8xf32>
    %cst_86 = arith.constant dense<0.000000e+00> : vector<8x8xf32>
    %199 = tpu.matmul %198, %187, %cst_86 {dimension_numbers = #tpu.dot_dimension_numbers<[1], [0], [0], [1], [0, 0, 1, 1], [], []>} : vector<8x8xf32>, vector<8x8xf32>, vector<8x8xf32> -> vector<8x8xf32>
    %200 = vector.extract_strided_slice %163 {offsets = [8, 0], sizes = [8, 32], strides = [1, 1]} : vector<32x32xf32> to vector<8x32xf32>
    %cst_87 = arith.constant dense<0.000000e+00> : vector<8x32xf32>
    %201 = tpu.matmul %199, %200, %cst_87 {dimension_numbers = #tpu.dot_dimension_numbers<[1], [0], [0], [1], [0, 0, 1, 1], [], []>} : vector<8x8xf32>, vector<8x32xf32>, vector<8x32xf32> -> vector<8x32xf32>
    %202 = arith.addf %182, %201 : vector<8x32xf32>
    %203 = vector.extract_strided_slice %162 {offsets = [0, 16], sizes = [8, 8], strides = [1, 1]} : vector<8x96xf32> to vector<8x8xf32>
    %cst_88 = arith.constant 0.353553385 : f32
    %204 = vector.broadcast %cst_88 : f32 to vector<8x8xf32>
    %205 = arith.mulf %203, %204 : vector<8x8xf32>
    %206 = vector.extract_strided_slice %162 {offsets = [0, 48], sizes = [8, 8], strides = [1, 1]} : vector<8x96xf32> to vector<8x8xf32>
    %207 = vector.extract_strided_slice %162 {offsets = [0, 80], sizes = [8, 8], strides = [1, 1]} : vector<8x96xf32> to vector<8x8xf32>
    %cst_89 = arith.constant dense<0.000000e+00> : vector<8x8xf32>
    %208 = tpu.matmul %205, %206, %cst_89 {dimension_numbers = #tpu.dot_dimension_numbers<[1], [1], [0], [0], [0, 0, 1, 0], [], []>} : vector<8x8xf32>, vector<8x8xf32>, vector<8x8xf32> -> vector<8x8xf32>
    %cst_90 = arith.constant dense<0xFF800000> : vector<8xf32>
    %209 = vector.multi_reduction <maximumf>, %208, %cst_90 [1] : vector<8x8xf32> to vector<8xf32>
    %210 = vector.shape_cast %209 : vector<8xf32> to vector<8x1xf32>
    %211 = vector.broadcast %210 : vector<8x1xf32> to vector<8x8xf32>
    %212 = arith.subf %208, %211 : vector<8x8xf32>
    %213 = math.exp %212 : vector<8x8xf32>
    %cst_91 = arith.constant dense<0.000000e+00> : vector<8xf32>
    %214 = vector.multi_reduction <add>, %213, %cst_91 [1] : vector<8x8xf32> to vector<8xf32>
    %215 = vector.shape_cast %214 : vector<8xf32> to vector<8x1xf32>
    %216 = tpu.reciprocal %215 {approx = true} : vector<8x1xf32> -> vector<8x1xf32>
    %217 = vector.broadcast %216 : vector<8x1xf32> to vector<8x8xf32>
    %218 = arith.mulf %213, %217 : vector<8x8xf32>
    %cst_92 = arith.constant dense<0.000000e+00> : vector<8x8xf32>
    %219 = tpu.matmul %218, %207, %cst_92 {dimension_numbers = #tpu.dot_dimension_numbers<[1], [0], [0], [1], [0, 0, 1, 1], [], []>} : vector<8x8xf32>, vector<8x8xf32>, vector<8x8xf32> -> vector<8x8xf32>
    %220 = vector.extract_strided_slice %163 {offsets = [16, 0], sizes = [8, 32], strides = [1, 1]} : vector<32x32xf32> to vector<8x32xf32>
    %cst_93 = arith.constant dense<0.000000e+00> : vector<8x32xf32>
    %221 = tpu.matmul %219, %220, %cst_93 {dimension_numbers = #tpu.dot_dimension_numbers<[1], [0], [0], [1], [0, 0, 1, 1], [], []>} : vector<8x8xf32>, vector<8x32xf32>, vector<8x32xf32> -> vector<8x32xf32>
    %222 = arith.addf %202, %221 : vector<8x32xf32>
    %223 = vector.extract_strided_slice %162 {offsets = [0, 24], sizes = [8, 8], strides = [1, 1]} : vector<8x96xf32> to vector<8x8xf32>
    %cst_94 = arith.constant 0.353553385 : f32
    %224 = vector.broadcast %cst_94 : f32 to vector<8x8xf32>
    %225 = arith.mulf %223, %224 : vector<8x8xf32>
    %226 = vector.extract_strided_slice %162 {offsets = [0, 56], sizes = [8, 8], strides = [1, 1]} : vector<8x96xf32> to vector<8x8xf32>
    %227 = vector.extract_strided_slice %162 {offsets = [0, 88], sizes = [8, 8], strides = [1, 1]} : vector<8x96xf32> to vector<8x8xf32>
    %cst_95 = arith.constant dense<0.000000e+00> : vector<8x8xf32>
    %228 = tpu.matmul %225, %226, %cst_95 {dimension_numbers = #tpu.dot_dimension_numbers<[1], [1], [0], [0], [0, 0, 1, 0], [], []>} : vector<8x8xf32>, vector<8x8xf32>, vector<8x8xf32> -> vector<8x8xf32>
    %cst_96 = arith.constant dense<0xFF800000> : vector<8xf32>
    %229 = vector.multi_reduction <maximumf>, %228, %cst_96 [1] : vector<8x8xf32> to vector<8xf32>
    %230 = vector.shape_cast %229 : vector<8xf32> to vector<8x1xf32>
    %231 = vector.broadcast %230 : vector<8x1xf32> to vector<8x8xf32>
    %232 = arith.subf %228, %231 : vector<8x8xf32>
    %233 = math.exp %232 : vector<8x8xf32>
    %cst_97 = arith.constant dense<0.000000e+00> : vector<8xf32>
    %234 = vector.multi_reduction <add>, %233, %cst_97 [1] : vector<8x8xf32> to vector<8xf32>
    %235 = vector.shape_cast %234 : vector<8xf32> to vector<8x1xf32>
    %236 = tpu.reciprocal %235 {approx = true} : vector<8x1xf32> -> vector<8x1xf32>
    %237 = vector.broadcast %236 : vector<8x1xf32> to vector<8x8xf32>
    %238 = arith.mulf %233, %237 : vector<8x8xf32>
    %cst_98 = arith.constant dense<0.000000e+00> : vector<8x8xf32>
    %239 = tpu.matmul %238, %227, %cst_98 {dimension_numbers = #tpu.dot_dimension_numbers<[1], [0], [0], [1], [0, 0, 1, 1], [], []>} : vector<8x8xf32>, vector<8x8xf32>, vector<8x8xf32> -> vector<8x8xf32>
    %240 = vector.extract_strided_slice %163 {offsets = [24, 0], sizes = [8, 32], strides = [1, 1]} : vector<32x32xf32> to vector<8x32xf32>
    %cst_99 = arith.constant dense<0.000000e+00> : vector<8x32xf32>
    %241 = tpu.matmul %239, %240, %cst_99 {dimension_numbers = #tpu.dot_dimension_numbers<[1], [0], [0], [1], [0, 0, 1, 1], [], []>} : vector<8x8xf32>, vector<8x32xf32>, vector<8x32xf32> -> vector<8x32xf32>
    %242 = arith.addf %222, %241 : vector<8x32xf32>
    %c0_100 = arith.constant 0 : index
    %c0_101 = arith.constant 0 : index
    %243 = vector.load %arg22[%c0_100, %c0_101] : memref<1x32xf32, #tpu.memory_space<vmem>>, vector<1x32xf32>
    %244 = vector.broadcast %243 : vector<1x32xf32> to vector<8x32xf32>
    %245 = arith.addf %242, %244 : vector<8x32xf32>
    %246 = arith.addf %157, %245 : vector<8x32xf32>
    %c0_102 = arith.constant 0 : index
    %c0_103 = arith.constant 0 : index
    %247 = vector.load %arg27[%c0_102, %c0_103] : memref<1x32xf32, #tpu.memory_space<vmem>>, vector<1x32xf32>
    %c0_104 = arith.constant 0 : index
    %c0_105 = arith.constant 0 : index
    %248 = vector.load %arg28[%c0_104, %c0_105] : memref<1x32xf32, #tpu.memory_space<vmem>>, vector<1x32xf32>
    %cst_106 = arith.constant dense<0.000000e+00> : vector<8xf32>
    %249 = vector.multi_reduction <add>, %246, %cst_106 [1] : vector<8x32xf32> to vector<8xf32>
    %250 = vector.shape_cast %249 : vector<8xf32> to vector<8x1xf32>
    %cst_107 = arith.constant 3.200000e+01 : f32
    %251 = vector.broadcast %cst_107 : f32 to vector<8x1xf32>
    %252 = arith.divf %250, %251 : vector<8x1xf32>
    %253 = vector.broadcast %252 : vector<8x1xf32> to vector<8x32xf32>
    %254 = arith.subf %246, %253 : vector<8x32xf32>
    %255 = arith.mulf %254, %254 : vector<8x32xf32>
    %cst_108 = arith.constant dense<0.000000e+00> : vector<8xf32>
    %256 = vector.multi_reduction <add>, %255, %cst_108 [1] : vector<8x32xf32> to vector<8xf32>
    %257 = vector.shape_cast %256 : vector<8xf32> to vector<8x1xf32>
    %cst_109 = arith.constant 3.200000e+01 : f32
    %258 = vector.broadcast %cst_109 : f32 to vector<8x1xf32>
    %259 = arith.divf %257, %258 : vector<8x1xf32>
    %260 = vector.broadcast %252 : vector<8x1xf32> to vector<8x32xf32>
    %261 = arith.subf %246, %260 : vector<8x32xf32>
    %cst_110 = arith.constant 9.99999974E-6 : f32
    %262 = vector.broadcast %cst_110 : f32 to vector<8x1xf32>
    %263 = arith.addf %259, %262 : vector<8x1xf32>
    %264 = math.rsqrt %263 : vector<8x1xf32>
    %265 = vector.broadcast %264 : vector<8x1xf32> to vector<8x32xf32>
    %266 = arith.mulf %261, %265 : vector<8x32xf32>
    %267 = vector.broadcast %247 : vector<1x32xf32> to vector<8x32xf32>
    %268 = arith.mulf %266, %267 : vector<8x32xf32>
    %269 = vector.broadcast %248 : vector<1x32xf32> to vector<8x32xf32>
    %270 = arith.addf %268, %269 : vector<8x32xf32>
    %c0_111 = arith.constant 0 : index
    %c0_112 = arith.constant 0 : index
    %271 = vector.load %arg23[%c0_111, %c0_112] : memref<32x48xf32, #tpu.memory_space<vmem>>, vector<32x48xf32>
    %cst_113 = arith.constant dense<0.000000e+00> : vector<8x48xf32>
    %272 = tpu.matmul %270, %271, %cst_113 {dimension_numbers = #tpu.dot_dimension_numbers<[1], [0], [0], [1], [0, 0, 1, 1], [], []>} : vector<8x32xf32>, vector<32x48xf32>, vector<8x48xf32> -> vector<8x48xf32>
    %c0_114 = arith.constant 0 : index
    %c0_115 = arith.constant 0 : index
    %273 = vector.load %arg24[%c0_114, %c0_115] : memref<1x48xf32, #tpu.memory_space<vmem>>, vector<1x48xf32>
    %274 = vector.broadcast %273 : vector<1x48xf32> to vector<8x48xf32>
    %275 = arith.addf %272, %274 : vector<8x48xf32>
    %cst_116 = arith.constant 0.000000e+00 : f32
    %276 = vector.broadcast %cst_116 : f32 to vector<8x48xf32>
    %277 = arith.maximumf %275, %276 : vector<8x48xf32>
    %c0_117 = arith.constant 0 : index
    %c0_118 = arith.constant 0 : index
    %278 = vector.load %arg25[%c0_117, %c0_118] : memref<48x32xf32, #tpu.memory_space<vmem>>, vector<48x32xf32>
    %cst_119 = arith.constant dense<0.000000e+00> : vector<8x32xf32>
    %279 = tpu.matmul %277, %278, %cst_119 {dimension_numbers = #tpu.dot_dimension_numbers<[1], [0], [0], [1], [0, 0, 1, 1], [], []>} : vector<8x48xf32>, vector<48x32xf32>, vector<8x32xf32> -> vector<8x32xf32>
    %c0_120 = arith.constant 0 : index
    %c0_121 = arith.constant 0 : index
    %280 = vector.load %arg26[%c0_120, %c0_121] : memref<1x32xf32, #tpu.memory_space<vmem>>, vector<1x32xf32>
    %281 = vector.broadcast %280 : vector<1x32xf32> to vector<8x32xf32>
    %282 = arith.addf %279, %281 : vector<8x32xf32>
    %283 = arith.addf %270, %282 : vector<8x32xf32>
    %c0_122 = arith.constant 0 : index
    %c0_123 = arith.constant 0 : index
    %284 = vector.load %arg29[%c0_122, %c0_123] : memref<1x32xf32, #tpu.memory_space<vmem>>, vector<1x32xf32>
    %c0_124 = arith.constant 0 : index
    %c0_125 = arith.constant 0 : index
    %285 = vector.load %arg30[%c0_124, %c0_125] : memref<1x32xf32, #tpu.memory_space<vmem>>, vector<1x32xf32>
    %cst_126 = arith.constant dense<0.000000e+00> : vector<8xf32>
    %286 = vector.multi_reduction <add>, %283, %cst_126 [1] : vector<8x32xf32> to vector<8xf32>
    %287 = vector.shape_cast %286 : vector<8xf32> to vector<8x1xf32>
    %cst_127 = arith.constant 3.200000e+01 : f32
    %288 = vector.broadcast %cst_127 : f32 to vector<8x1xf32>
    %289 = arith.divf %287, %288 : vector<8x1xf32>
    %290 = vector.broadcast %289 : vector<8x1xf32> to vector<8x32xf32>
    %291 = arith.subf %283, %290 : vector<8x32xf32>
    %292 = arith.mulf %291, %291 : vector<8x32xf32>
    %cst_128 = arith.constant dense<0.000000e+00> : vector<8xf32>
    %293 = vector.multi_reduction <add>, %292, %cst_128 [1] : vector<8x32xf32> to vector<8xf32>
    %294 = vector.shape_cast %293 : vector<8xf32> to vector<8x1xf32>
    %cst_129 = arith.constant 3.200000e+01 : f32
    %295 = vector.broadcast %cst_129 : f32 to vector<8x1xf32>
    %296 = arith.divf %294, %295 : vector<8x1xf32>
    %297 = vector.broadcast %289 : vector<8x1xf32> to vector<8x32xf32>
    %298 = arith.subf %283, %297 : vector<8x32xf32>
    %cst_130 = arith.constant 9.99999974E-6 : f32
    %299 = vector.broadcast %cst_130 : f32 to vector<8x1xf32>
    %300 = arith.addf %296, %299 : vector<8x1xf32>
    %301 = math.rsqrt %300 : vector<8x1xf32>
    %302 = vector.broadcast %301 : vector<8x1xf32> to vector<8x32xf32>
    %303 = arith.mulf %298, %302 : vector<8x32xf32>
    %304 = vector.broadcast %284 : vector<1x32xf32> to vector<8x32xf32>
    %305 = arith.mulf %303, %304 : vector<8x32xf32>
    %306 = vector.broadcast %285 : vector<1x32xf32> to vector<8x32xf32>
    %307 = arith.addf %305, %306 : vector<8x32xf32>
    %c0_131 = arith.constant 0 : index
    %c0_132 = arith.constant 0 : index
    %308 = vector.load %arg31[%c0_131, %c0_132] : memref<8x32xf32, #tpu.memory_space<vmem>>, vector<8x32xf32>
    tpu.vector_store %arg31[%c0_131, %c0_132], %307 {strides = array<i32>} : memref<8x32xf32, #tpu.memory_space<vmem>>, vector<8x32xf32>,
    %c0_133 = arith.constant 0 : index
    %c0_134 = arith.constant 0 : index
    %309 = vector.load %arg5[%c0_133, %c0_134] : memref<32x3xf32, #tpu.memory_space<vmem>>, vector<32x3xf32>
    %cst_135 = arith.constant dense<0.000000e+00> : vector<8x3xf32>
    %310 = tpu.matmul %307, %309, %cst_135 {dimension_numbers = #tpu.dot_dimension_numbers<[1], [0], [0], [1], [0, 0, 1, 1], [], []>} : vector<8x32xf32>, vector<32x3xf32>, vector<8x3xf32> -> vector<8x3xf32>
    %c0_136 = arith.constant 0 : index
    %c0_137 = arith.constant 0 : index
    %311 = vector.load %arg6[%c0_136, %c0_137] : memref<1x3xf32, #tpu.memory_space<vmem>>, vector<1x3xf32>
    %312 = vector.broadcast %311 : vector<1x3xf32> to vector<8x3xf32>
    %313 = arith.addf %310, %312 : vector<8x3xf32>
    %c0_138 = arith.constant 0 : index
    %c0_139 = arith.constant 0 : index
    %314 = vector.load %arg32[%c0_138, %c0_139] : memref<8x3xf32, #tpu.memory_space<vmem>>, vector<8x3xf32>
    tpu.vector_store %arg32[%c0_138, %c0_139], %313 {strides = array<i32>} : memref<8x3xf32, #tpu.memory_space<vmem>>, vector<8x3xf32>,
    return
  }
  func.func @transform_0(%arg0: i32) -> (i32, i32) {
    %c0_i32 = arith.constant 0 : i32
    %c0_i32_0 = arith.constant 0 : i32
    return %arg0, %c0_i32 : i32, i32
  }
  func.func @transform_1(%arg0: i32) -> (i32, i32) {
    %c0_i32 = arith.constant 0 : i32
    %c0_i32_0 = arith.constant 0 : i32
    %c0_i32_1 = arith.constant 0 : i32
    return %c0_i32, %c0_i32_0 : i32, i32
  }
  func.func @transform_2(%arg0: i32) -> (i32, i32) {
    %c0_i32 = arith.constant 0 : i32
    %c0_i32_0 = arith.constant 0 : i32
    %c0_i32_1 = arith.constant 0 : i32
    return %c0_i32, %c0_i32_0 : i32, i32
  }
  func.func @transform_3(%arg0: i32) -> (i32, i32) {
    %c0_i32 = arith.constant 0 : i32
    %c0_i32_0 = arith.constant 0 : i32
    %c0_i32_1 = arith.constant 0 : i32
    return %c0_i32, %c0_i32_0 : i32, i32
  }
  func.func @transform_4(%arg0: i32) -> (i32, i32) {
    %c0_i32 = arith.constant 0 : i32
    %c0_i32_0 = arith.constant 0 : i32
    %c0_i32_1 = arith.constant 0 : i32
    return %c0_i32, %c0_i32_0 : i32, i32
  }
  func.func @transform_5(%arg0: i32) -> (i32, i32) {
    %c0_i32 = arith.constant 0 : i32
    %c0_i32_0 = arith.constant 0 : i32
    %c0_i32_1 = arith.constant 0 : i32
    return %c0_i32, %c0_i32_0 : i32, i32
  }
  func.func @transform_6(%arg0: i32) -> (i32, i32) {
    %c0_i32 = arith.constant 0 : i32
    %c0_i32_0 = arith.constant 0 : i32
    %c0_i32_1 = arith.constant 0 : i32
    return %c0_i32, %c0_i32_0 : i32, i32
  }
  func.func @transform_7(%arg0: i32) -> (i32, i32) {
    %c0_i32 = arith.constant 0 : i32
    %c0_i32_0 = arith.constant 0 : i32
    %c0_i32_1 = arith.constant 0 : i32
    return %c0_i32, %c0_i32_0 : i32, i32
  }
  func.func @transform_8(%arg0: i32) -> (i32, i32) {
    %c0_i32 = arith.constant 0 : i32
    %c0_i32_0 = arith.constant 0 : i32
    %c0_i32_1 = arith.constant 0 : i32
    return %c0_i32, %c0_i32_0 : i32, i32
  }
  func.func @transform_9(%arg0: i32) -> (i32, i32) {
    %c0_i32 = arith.constant 0 : i32
    %c0_i32_0 = arith.constant 0 : i32
    %c0_i32_1 = arith.constant 0 : i32
    return %c0_i32, %c0_i32_0 : i32, i32
  }
  func.func @transform_10(%arg0: i32) -> (i32, i32) {
    %c0_i32 = arith.constant 0 : i32
    %c0_i32_0 = arith.constant 0 : i32
    %c0_i32_1 = arith.constant 0 : i32
    return %c0_i32, %c0_i32_0 : i32, i32
  }
  func.func @transform_11(%arg0: i32) -> (i32, i32) {
    %c0_i32 = arith.constant 0 : i32
    %c0_i32_0 = arith.constant 0 : i32
    %c0_i32_1 = arith.constant 0 : i32
    return %c0_i32, %c0_i32_0 : i32, i32
  }
  func.func @transform_12(%arg0: i32) -> (i32, i32) {
    %c0_i32 = arith.constant 0 : i32
    %c0_i32_0 = arith.constant 0 : i32
    %c0_i32_1 = arith.constant 0 : i32
    return %c0_i32, %c0_i32_0 : i32, i32
  }
  func.func @transform_13(%arg0: i32) -> (i32, i32) {
    %c0_i32 = arith.constant 0 : i32
    %c0_i32_0 = arith.constant 0 : i32
    %c0_i32_1 = arith.constant 0 : i32
    return %c0_i32, %c0_i32_0 : i32, i32
  }
  func.func @transform_14(%arg0: i32) -> (i32, i32) {
    %c0_i32 = arith.constant 0 : i32
    %c0_i32_0 = arith.constant 0 : i32
    %c0_i32_1 = arith.constant 0 : i32
    return %c0_i32, %c0_i32_0 : i32, i32
  }
  func.func @transform_15(%arg0: i32) -> (i32, i32) {
    %c0_i32 = arith.constant 0 : i32
    %c0_i32_0 = arith.constant 0 : i32
    %c0_i32_1 = arith.constant 0 : i32
    return %c0_i32, %c0_i32_0 : i32, i32
  }
  func.func @transform_16(%arg0: i32) -> (i32, i32) {
    %c0_i32 = arith.constant 0 : i32
    %c0_i32_0 = arith.constant 0 : i32
    %c0_i32_1 = arith.constant 0 : i32
    return %c0_i32, %c0_i32_0 : i32, i32
  }
  func.func @transform_17(%arg0: i32) -> (i32, i32) {
    %c0_i32 = arith.constant 0 : i32
    %c0_i32_0 = arith.constant 0 : i32
    %c0_i32_1 = arith.constant 0 : i32
    return %c0_i32, %c0_i32_0 : i32, i32
  }
  func.func @transform_18(%arg0: i32) -> (i32, i32) {
    %c0_i32 = arith.constant 0 : i32
    %c0_i32_0 = arith.constant 0 : i32
    %c0_i32_1 = arith.constant 0 : i32
    return %c0_i32, %c0_i32_0 : i32, i32
  }
  func.func @transform_19(%arg0: i32) -> (i32, i32) {
    %c0_i32 = arith.constant 0 : i32
    %c0_i32_0 = arith.constant 0 : i32
    %c0_i32_1 = arith.constant 0 : i32
    return %c0_i32, %c0_i32_0 : i32, i32
  }
  func.func @transform_20(%arg0: i32) -> (i32, i32) {
    %c0_i32 = arith.constant 0 : i32
    %c0_i32_0 = arith.constant 0 : i32
    %c0_i32_1 = arith.constant 0 : i32
    return %c0_i32, %c0_i32_0 : i32, i32
  }
  func.func @transform_21(%arg0: i32) -> (i32, i32) {
    %c0_i32 = arith.constant 0 : i32
    %c0_i32_0 = arith.constant 0 : i32
    %c0_i32_1 = arith.constant 0 : i32
    return %c0_i32, %c0_i32_0 : i32, i32
  }
  func.func @transform_22(%arg0: i32) -> (i32, i32) {
    %c0_i32 = arith.constant 0 : i32
    %c0_i32_0 = arith.constant 0 : i32
    %c0_i32_1 = arith.constant 0 : i32
    return %c0_i32, %c0_i32_0 : i32, i32
  }
  func.func @transform_23(%arg0: i32) -> (i32, i32) {
    %c0_i32 = arith.constant 0 : i32
    %c0_i32_0 = arith.constant 0 : i32
    %c0_i32_1 = arith.constant 0 : i32
    return %c0_i32, %c0_i32_0 : i32, i32
  }
  func.func @transform_24(%arg0: i32) -> (i32, i32) {
    %c0_i32 = arith.constant 0 : i32
    %c0_i32_0 = arith.constant 0 : i32
    %c0_i32_1 = arith.constant 0 : i32
    return %c0_i32, %c0_i32_0 : i32, i32
  }
  func.func @transform_25(%arg0: i32) -> (i32, i32) {
    %c0_i32 = arith.constant 0 : i32
    %c0_i32_0 = arith.constant 0 : i32
    %c0_i32_1 = arith.constant 0 : i32
    return %c0_i32, %c0_i32_0 : i32, i32
  }
  func.func @transform_26(%arg0: i32) -> (i32, i32) {
    %c0_i32 = arith.constant 0 : i32
    %c0_i32_0 = arith.constant 0 : i32
    %c0_i32_1 = arith.constant 0 : i32
    return %c0_i32, %c0_i32_0 : i32, i32
  }
  func.func @transform_27(%arg0: i32) -> (i32, i32) {
    %c0_i32 = arith.constant 0 : i32
    %c0_i32_0 = arith.constant 0 : i32
    %c0_i32_1 = arith.constant 0 : i32
    return %c0_i32, %c0_i32_0 : i32, i32
  }
  func.func @transform_28(%arg0: i32) -> (i32, i32) {
    %c0_i32 = arith.constant 0 : i32
    %c0_i32_0 = arith.constant 0 : i32
    %c0_i32_1 = arith.constant 0 : i32
    return %c0_i32, %c0_i32_0 : i32, i32
  }
  func.func @transform_29(%arg0: i32) -> (i32, i32) {
    %c0_i32 = arith.constant 0 : i32
    %c0_i32_0 = arith.constant 0 : i32
    %c0_i32_1 = arith.constant 0 : i32
    return %c0_i32, %c0_i32_0 : i32, i32
  }
  func.func @transform_30(%arg0: i32) -> (i32, i32) {
    %c0_i32 = arith.constant 0 : i32
    %c0_i32_0 = arith.constant 0 : i32
    return %arg0, %c0_i32 : i32, i32
  }
  func.func @transform_31(%arg0: i32) -> (i32, i32) {
    %c0_i32 = arith.constant 0 : i32
    %c0_i32_0 = arith.constant 0 : i32
    return %arg0, %c0_i32 : i32, i32
  }
}

</mosaic_0001>

<bundles_post_ra>
// kernel: transformer_model.1
= control target key start
LH: loop header
LB: loop body
LE: loop exit
PB: predicated region body
PF: predicated region fallthrough
CT: control target
= control target key end

     0   :  { %s3345_s6 = smov 1   ;;  %s3346_s10 = smov 2   ;;  %s3968_s0 = inlined_call_operand.smem [shape: u32[32], index: -1, kind: input, shape index: {}] }
   0x1   :  { %s3412_s5 = sld [smem:[%s3968_s0]]   ;;  %s3347_s14 = smov 3  }
   0x2   :  { %s3417_s9 = sld [smem:[%s3968_s0 + %s3345_s6]]   ;;  %s3348_s18 = smov 4  }
   0x3   :  { %s3422_s13 = sld [smem:[%s3968_s0 + %s3346_s10]]   ;;  %s3349_s22 = smov 5  }
   0x4   :  { %s3427_s17 = sld [smem:[%s3968_s0 + %s3347_s14]]   ;;  %s3350_s26 = smov 6  }
   0x5   :  { %s3432_s21 = sld [smem:[%s3968_s0 + %s3348_s18]]   ;;  %s3351_s30 = smov 7  }
   0x6   :  { %s3437_s25 = sld [smem:[%s3968_s0 + %s3349_s22]]   ;;  %s3352_s4 = smov 8  }
   0x7   :  { %s3442_s29 = sld [smem:[%s3968_s0 + %s3350_s26]]   ;;  %s3353_s10 = smov 9  }
   0x8   :  { %3982 = sst [smem:[#allocation32_spill]] %s3417_s9  ;;  %s3354_s15 = smov 10  }
   0x9   :  { %s3447_s3 = sld [smem:[%s3968_s0 + %s3351_s30]]   ;;  %s3355_s20 = smov 11  }
   0xa   :  { %3983 = sst [smem:[#allocation33_spill]] %s3427_s17  ;;  %s3356_s26 = smov 12  }
   0xb   :  { %3984 = sst [smem:[#allocation34_spill]] %s3432_s21  ;;  %s3357_s1 = smov 13  }
   0xc   :  { %3985 = sst [smem:[#allocation35_spill]] %s3437_s25  ;;  %s3358_s7 = smov 14  }
   0xd   :  { %3986 = sst [smem:[#allocation36_spill]] %s3442_s29  ;;  %s3360_s22 = smov 16  }
   0xe   :  { %s3452_s8 = sld [smem:[%s3968_s0 + %s3352_s4]]   ;;  %s3361_s28 = smov 17  }
   0xf   :  { %3987 = sst [smem:[#allocation37_spill]] %s3447_s3 }
  0x10   :  { %s3457_s14 = sld [smem:[%s3968_s0 + %s3353_s10]]  }
  0x11   :  { %s3462_s19 = sld [smem:[%s3968_s0 + %s3354_s15]]   ;;  %s3359_s15 = smov 15  }
  0x12   :  { %s3467_s24 = sld [smem:[%s3968_s0 + %s3355_s20]]  }
  0x13   :  { %s3472_s30 = sld [smem:[%s3968_s0 + %s3356_s26]]  }
  0x14   :  { %3988 = sst [smem:[#allocation38_spill]] %s3452_s8 }
  0x15   :  { %s3477_s6 = sld [smem:[%s3968_s0 + %s3357_s1]]  }
  0x16   :  { %3989 = sst [smem:[#allocation39_spill]] %s3457_s14 }
  0x17   :  { %3990 = sst [smem:[#allocation40_spill]] %s3462_s19 }
  0x18   :  { %3991 = sst [smem:[#allocation41_spill]] %s3467_s24 }
  0x19   :  { %3992 = sst [smem:[#allocation42_spill]] %s3472_s30 }
  0x1a   :  { %s3482_s12 = sld [smem:[%s3968_s0 + %s3358_s7]]   ;;  %s3362_s7 = smov 18  }
  0x1b   :  { %3993 = sst [smem:[#allocation43_spill]] %s3477_s6 }
  0x1c   :  { %s3487_s20 = sld [smem:[%s3968_s0 + %s3359_s15]]   ;;  %s3363_s15 = smov 19  }
  0x1d   :  { %s3492_s27 = sld [smem:[%s3968_s0 + %s3360_s22]]   ;;  %s3364_s22 = smov 20  }
  0x1e   :  { %s3497_s4 = sld [smem:[%s3968_s0 + %s3361_s28]]   ;;  %s3365_s28 = smov 21  }
  0x1f   :  { %s3502_s25 = sld [smem:[%s3968_s0 + %s3362_s7]]   ;;  %s3366_s7 = smov 22  }
  0x20   :  { %3994 = sst [smem:[#allocation44_spill]] %s3482_s12 }
  0x21   :  { %s3507_s21 = sld [smem:[%s3968_s0 + %s3363_s15]]   ;;  %s3367_s15 = smov 23  }
  0x22   :  { %s3512_s6 = sld [smem:[%s3968_s0 + %s3364_s22]]   ;;  %s3368_s22 = smov 24  }
  0x23   :  { %3995 = sst [smem:[#allocation45_spill]] %s3492_s27 }
  0x24   :  { %s3517_s24 = sld [smem:[%s3968_s0 + %s3365_s28]]   ;;  %s3369_s28 = smov 25  }
  0x25   :  { %3996 = sst [smem:[#allocation46_spill]] %s3502_s25 }
  0x26   :  { %s3522_s12 = sld [smem:[%s3968_s0 + %s3366_s7]]   ;;  %s3370_s7 = smov 26  }
  0x27   :  { %s3527_s30 = sld [smem:[%s3968_s0 + %s3367_s15]]   ;;  %s3371_s15 = smov 27  }
  0x28   :  { %s3532_s19 = sld [smem:[%s3968_s0 + %s3368_s22]]   ;;  %s3372_s22 = smov 28  }
  0x29   :  { %s3537_s14 = sld [smem:[%s3968_s0 + %s3369_s28]]   ;;  %s3373_s28 = smov 29  }
  0x2a   :  { %s3542_s8 = sld [smem:[%s3968_s0 + %s3370_s7]]   ;;  %s3374_s7 = smov 30  }
  0x2b   :  { %s3547_s3 = sld [smem:[%s3968_s0 + %s3371_s15]]   ;;  %s3375_s15 = smov 31  }
  0x2c   :  { %s3557_s9 = sld [smem:[%s3968_s0 + %s3373_s28]]  }
  0x2d   :  { %s3562_s17 = sld [smem:[%s3968_s0 + %s3374_s7]]  }
  0x2e   :  { %3997 = sst [smem:[#allocation47_spill]] %s3532_s19 }
  0x2f   :  { %s3552_s19 = sld [smem:[%s3968_s0 + %s3372_s22]]  }
  0x30   :  { %s3567_s29 = sld [smem:[%s3968_s0 + %s3375_s15]]  }
  0x31   :  { %69 = vsyncpa [#allocation3], 0 }
  0x32   :  { %70 = vsyncpa [#allocation5], 0 }
  0x33   :  { %71 = vsyncpa [#allocation8], 0 }
  0x34   :  { %72 = vsyncpa [#allocation11], 0 }
  0x35   :  { %73 = vsyncpa [#allocation14], 0 }
  0x36   :  { %74 = vsyncpa [#allocation17], 0 }
  0x37   :  { %75 = vsyncpa [#allocation20], 0 }
  0x38   :  { %76 = vsyncpa [#allocation23], 0  ;;  %s3569_s22 = smov 0  }
  0x39 LB: > { %s3998_s27 = sld [smem:[#allocation45_spill]]  ;;  %s3578_s23 = sadd.s32 4294967295, %s3343_s22   ;;  %s3343_s22 = sphi %s3569_s22, %s82_s22  }
  0x3a   : > { %s3999_s25 = sld [smem:[#allocation46_spill]]  ;;  %p2555_p0 = scmp.ge.s32.totalorder %s3343_s22, 1 }
  0x3b   : > { %4000 = sst [smem:[#allocation48_spill]] %s3343_s22  ;;  %p774_p1 = scmp.lt.s32.totalorder %s3343_s22, 3 }
  0x3c   : > { %p2730_p2 = scmp.eq.s32.totalorder %s3578_s23, 0  ;;  %s3376_s28 = smov [#allocation4]  }
  0x3d   : > { %p3583_p3 = pnand %p2555_p0, %p774_p1  ;;  %s842_s1 = sshll.u32 %s3376_s28, 4  ;;  %s843_s1 = int_to_ptr.vmem [resolvable:$true] %s842_s1 }
  0x3e   : > { %s3377_s10 = smov [#allocation7]  }
  0x3f   : > { %s840_s0 = sshll.u32 %s3998_s27, 4  ;;  %p2687_p4 = pneg %p3583_p3  ;;  %s3575_s0 = int_to_ptr.hbm [resolvable:$true] %s840_s0 }
  0x40   : > { %s863_s2 = sshll.u32 %s3999_s25, 4  ;;  %s3598_s11 = sshll.u32 %s3377_s10, 4  ;;  %s3590_s2 = int_to_ptr.hbm [resolvable:$true] %s863_s2  ;;  %s866_s11 = int_to_ptr.vmem [resolvable:$true] %s3598_s11 }
  0x41   : > { %p3594_p5 = pnand %p2730_p2, %p2687_p4  ;;  %s2885_s16 = sshra.s32 %s3575_s0, 4  ;;  %s2886_s16 = int_to_ptr.hbm [resolvable:$true] %s2885_s16 }
  0x42   : > { %s2887_s18 = scalar_lea.hbm %s2886_s16, 1  ;;  %s2892_s22 = scalar_lea.hbm %s3998_s27, 1 }
  0x43   : > { %p2888_p6 = scmp.ne.s32.totalorder %s2886_s16, %s2887_s18  ;;  %p3605_p7 = pneg %p3594_p5 }
  0x44   : > { %p2893_p10 = scmp.lt.s32.totalorder %s2886_s16, %s3998_s27  ;;  %p2894_p11 = scmp.lt.s32.totalorder %s2892_s22, %s2887_s18 }
  0x45   : > { %p2890_p8 = pnand %p3605_p7, %p2888_p6 }
  0x46   : > { %p2895_p12 = por %p2894_p11, %p2893_p10 }
  0x47   : > { %p2891_p9 = pneg %p2890_p8 }
  0x49   : > { %p2896_p13 = pnand %p2895_p12, %p2891_p9 }
  0x4b   : > { %2899 = shalt.err (!%p2896_p13)
}
  0x4c   : > { %2693 = dma.hbm_to_vmem [thread:$0]  (!%p3594_p5), %s3575_s0, 16, %s843_s1, [#allocation5]  }
  0x4d   : > { %s2915_s10 = sshra.s32 %s3590_s2, 4  ;;  %s2922_s16 = scalar_lea.hbm %s3999_s25, 32  ;;  %s2916_s10 = int_to_ptr.hbm [resolvable:$true] %s2915_s10 }
  0x4e   : > { %s2917_s15 = scalar_lea.hbm %s2916_s10, 32  ;;  %p2923_p6 = scmp.lt.s32.totalorder %s2916_s10, %s3999_s25 }
  0x4f   : > { %p2918_p0 = scmp.ne.s32.totalorder %s2916_s10, %s2917_s15  ;;  %p2924_p8 = scmp.lt.s32.totalorder %s2922_s16, %s2917_s15 }
  0x51   : > { %p2920_p1 = pnand %p2918_p0, %p3605_p7  ;;  %p2925_p9 = por %p2924_p8, %p2923_p6 }
  0x53   : > { %p2921_p4 = pneg %p2920_p1 }
  0x55   : > { %p2926_p10 = pnand %p2925_p9, %p2921_p4 }
  0x57   : > { %2929 = shalt.err (!%p2926_p10)
}
  0x58   : > { %s3378_s22 = smov 128   ;;  %s3379_s0 = smov 8  }
  0x59   : > { %2699 = dma.hbm_to_vmem [thread:$0]  (!%p3594_p5), %s3590_s2, 512, %s866_s11, [#allocation8], %s3378_s22, %s3378_s22, %s3379_s0  }
  0x5a   : > { %s4004_s1 = sshll.u32 %s3512_s6, 4  ;;  %s3380_s15 = smov [#allocation10]   ;;  %s890_s1 = int_to_ptr.hbm [resolvable:$true] %s4004_s1 }
  0x5b   : > { %s891_s18 = sshll.u32 %s3380_s15, 4  ;;  %s915_s10 = sshll.u32 %s3522_s12, 4  ;;  %s892_s18 = int_to_ptr.vmem [resolvable:$true] %s891_s18  ;;  %s3632_s10 = int_to_ptr.hbm [resolvable:$true] %s915_s10 }
  0x5c   : > { %s2945_s16 = sshra.s32 %s890_s1, 4  ;;  %s2952_s27 = scalar_lea.hbm %s3512_s6, 32  ;;  %s2946_s16 = int_to_ptr.hbm [resolvable:$true] %s2945_s16 }
  0x5d   : > { %s2947_s25 = scalar_lea.hbm %s2946_s16, 32  ;;  %p2953_p0 = scmp.lt.s32.totalorder %s2946_s16, %s3512_s6 }
  0x5e   : > { %p2948_p11 = scmp.ne.s32.totalorder %s2946_s16, %s2947_s25  ;;  %p2954_p1 = scmp.lt.s32.totalorder %s2952_s27, %s2947_s25 }
  0x60   : > { %p2950_p12 = pnand %p2948_p11, %p3605_p7  ;;  %p2955_p4 = por %p2954_p1, %p2953_p0 }
  0x62   : > { %p2951_p13 = pneg %p2950_p12 }
  0x64   : > { %p2956_p6 = pnand %p2955_p4, %p2951_p13 }
  0x66   : > { %2959 = shalt.err (!%p2956_p6)
}
  0x67   : > { %2705 = dma.hbm_to_vmem [thread:$0]  (!%p3594_p5), %s890_s1, 512, %s892_s18, [#allocation11], %s3378_s22, %s3378_s22, %s3379_s0  }
  0x68   : > { %s945_s2 = sshll.u32 %s3537_s14, 4  ;;  %s3381_s11 = smov [#allocation13]   ;;  %s3644_s2 = int_to_ptr.hbm [resolvable:$true] %s945_s2 }
  0x69   : > { %s917_s15 = sshll.u32 %s3381_s11, 4  ;;  %s2975_s25 = sshra.s32 %s3632_s10, 4  ;;  %s918_s15 = int_to_ptr.vmem [resolvable:$true] %s917_s15  ;;  %s2976_s25 = int_to_ptr.hbm [resolvable:$true] %s2975_s25 }
  0x6a   : > { %s2977_s27 = scalar_lea.hbm %s2976_s25, 32  ;;  %s2982_s16 = scalar_lea.hbm %s3522_s12, 32 }
  0x6b   : > { %p2978_p8 = scmp.ne.s32.totalorder %s2976_s25, %s2977_s27  ;;  %p2983_p11 = scmp.lt.s32.totalorder %s2976_s25, %s3522_s12 }
  0x6c   : > { %p2984_p12 = scmp.lt.s32.totalorder %s2982_s16, %s2977_s27 }
  0x6d   : > { %p2980_p9 = pnand %p2978_p8, %p3605_p7 }
  0x6e   : > { %p2985_p13 = por %p2984_p12, %p2983_p11 }
  0x6f   : > { %p2981_p10 = pneg %p2980_p9 }
  0x71   : > { %p2986_p0 = pnand %p2985_p13, %p2981_p10 }
  0x73   : > { %2989 = shalt.err (!%p2986_p0)
}
  0x74   : > { %2711 = dma.hbm_to_vmem [thread:$0]  (!%p3594_p5), %s3632_s10, 512, %s918_s15, [#allocation14], %s3378_s22, %s3378_s22, %s3379_s0  }
  0x75   : > { %s3382_s1 = smov [#allocation16]   ;;  %s969_s11 = sshll.u32 %s3547_s3, 4  ;;  %s3658_s11 = int_to_ptr.hbm [resolvable:$true] %s969_s11 }
  0x76   : > { %s947_s18 = sshll.u32 %s3382_s1, 4  ;;  %s3005_s25 = sshra.s32 %s3644_s2, 4  ;;  %s948_s18 = int_to_ptr.vmem [resolvable:$true] %s947_s18  ;;  %s3006_s25 = int_to_ptr.hbm [resolvable:$true] %s3005_s25 }
  0x77   : > { %s3007_s27 = scalar_lea.hbm %s3006_s25, 1  ;;  %s3012_s16 = scalar_lea.hbm %s3537_s14, 1 }
  0x78   : > { %p3008_p1 = scmp.ne.s32.totalorder %s3006_s25, %s3007_s27  ;;  %p3013_p8 = scmp.lt.s32.totalorder %s3006_s25, %s3537_s14 }
  0x79   : > { %p3014_p9 = scmp.lt.s32.totalorder %s3012_s16, %s3007_s27 }
  0x7a   : > { %p3010_p4 = pnand %p3008_p1, %p3605_p7 }
  0x7b   : > { %p3015_p10 = por %p3014_p9, %p3013_p8 }
  0x7c   : > { %p3011_p6 = pneg %p3010_p4 }
  0x7e   : > { %p3016_p11 = pnand %p3015_p10, %p3011_p6 }
  0x80   : > { %3019 = shalt.err (!%p3016_p11)
}
  0x81   : > { %2717 = dma.hbm_to_vmem [thread:$0]  (!%p3594_p5), %s3644_s2, 16, %s948_s18, [#allocation17]  }
  0x82   : > { %s828_s22 = sshll.u32 %s3487_s20, 4  ;;  %s3383_s0 = smov [#allocation19]   ;;  %s3669_s22 = int_to_ptr.hbm [resolvable:$true] %s828_s22 }
  0x83   : > { %s971_s10 = sshll.u32 %s3383_s0, 4  ;;  %s3035_s15 = sshra.s32 %s3658_s11, 4  ;;  %s972_s10 = int_to_ptr.vmem [resolvable:$true] %s971_s10  ;;  %s3036_s15 = int_to_ptr.hbm [resolvable:$true] %s3035_s15 }
  0x84   : > { %s3037_s1 = scalar_lea.hbm %s3036_s15, 1  ;;  %s3042_s25 = scalar_lea.hbm %s3547_s3, 1 }
  0x85   : > { %p3038_p12 = scmp.ne.s32.totalorder %s3036_s15, %s3037_s1  ;;  %p3043_p1 = scmp.lt.s32.totalorder %s3036_s15, %s3547_s3 }
  0x86   : > { %p3044_p4 = scmp.lt.s32.totalorder %s3042_s25, %s3037_s1 }
  0x87   : > { %p3040_p13 = pnand %p3038_p12, %p3605_p7 }
  0x88   : > { %p3045_p6 = por %p3044_p4, %p3043_p1 }
  0x89   : > { %p3041_p0 = pneg %p3040_p13 }
  0x8b   : > { %p3046_p8 = pnand %p3045_p6, %p3041_p0 }
  0x8d   : > { %3049 = shalt.err (!%p3046_p8)
}
  0x8e   : > { %2723 = dma.hbm_to_vmem [thread:$0]  (!%p3594_p5), %s3658_s11, 16, %s972_s10, [#allocation20]  }
  0x8f   : > { %s3384_s2 = smov [#allocation2]   ;;  %s852_s27 = sshll.u32 %s3497_s4, 4  ;;  %s3680_s27 = int_to_ptr.hbm [resolvable:$true] %s852_s27 }
  0x90   : > { %s830_s18 = sshll.u32 %s3384_s2, 4  ;;  %s3065_s16 = sshra.s32 %s3669_s22, 4  ;;  %s831_s18 = int_to_ptr.vmem [resolvable:$true] %s830_s18  ;;  %s3066_s16 = int_to_ptr.hbm [resolvable:$true] %s3065_s16 }
  0x91   : > { %s3067_s0 = scalar_lea.hbm %s3066_s16, 1  ;;  %s3072_s15 = scalar_lea.hbm %s3487_s20, 1 }
  0x92   : > { %p3068_p9 = scmp.ne.s32.totalorder %s3066_s16, %s3067_s0  ;;  %p3073_p12 = scmp.lt.s32.totalorder %s3066_s16, %s3487_s20 }
  0x93   : > { %p3074_p13 = scmp.lt.s32.totalorder %s3072_s15, %s3067_s0 }
  0x94   : > { %p3070_p10 = pnand %p3068_p9, %p3605_p7 }
  0x95   : > { %p3075_p0 = por %p3074_p13, %p3073_p12 }
  0x96   : > { %p3071_p11 = pneg %p3070_p10 }
  0x98   : > { %p3076_p1 = pnand %p3075_p0, %p3071_p11 }
  0x9a   : > { %3079 = shalt.err (!%p3076_p1)
}
  0x9b   : > { %2690 = dma.hbm_to_vmem [thread:$0]  (!%p3594_p5), %s3669_s22, 16, %s831_s18, [#allocation3]  }
  0x9c   : > { %s878_s11 = sshll.u32 %s3507_s21, 4  ;;  %s3385_s10 = smov [#allocation6]   ;;  %s3691_s11 = int_to_ptr.hbm [resolvable:$true] %s878_s11 }
  0x9d   : > { %s854_s1 = sshll.u32 %s3385_s10, 4  ;;  %s3095_s25 = sshra.s32 %s3680_s27, 4  ;;  %s855_s1 = int_to_ptr.vmem [resolvable:$true] %s854_s1  ;;  %s3096_s25 = int_to_ptr.hbm [resolvable:$true] %s3095_s25 }
  0x9e   : > { %s3097_s2 = scalar_lea.hbm %s3096_s25, 1  ;;  %s3102_s16 = scalar_lea.hbm %s3497_s4, 1 }
  0x9f   : > { %p3098_p4 = scmp.ne.s32.totalorder %s3096_s25, %s3097_s2  ;;  %p3103_p9 = scmp.lt.s32.totalorder %s3096_s25, %s3497_s4 }
  0xa0   : > { %p3104_p10 = scmp.lt.s32.totalorder %s3102_s16, %s3097_s2 }
  0xa1   : > { %p3100_p6 = pnand %p3098_p4, %p3605_p7 }
  0xa2   : > { %p3105_p11 = por %p3104_p10, %p3103_p9 }
  0xa3   : > { %p3101_p8 = pneg %p3100_p6 }
  0xa5   : > { %p3106_p12 = pnand %p3105_p11, %p3101_p8 }
  0xa7   : > { %3109 = shalt.err (!%p3106_p12)
}
  0xa8   : > { %2696 = dma.hbm_to_vmem [thread:$0]  (!%p3594_p5), %s3680_s27, 16, %s855_s1, [#allocation5]  }
  0xa9   : > { %s3386_s22 = smov [#allocation9]   ;;  %s904_s0 = sshll.u32 %s3517_s24, 4  ;;  %s3702_s0 = int_to_ptr.hbm [resolvable:$true] %s904_s0 }
  0xaa   : > { %s880_s18 = sshll.u32 %s3386_s22, 4  ;;  %s3125_s15 = sshra.s32 %s3691_s11, 4  ;;  %s881_s18 = int_to_ptr.vmem [resolvable:$true] %s880_s18  ;;  %s3126_s15 = int_to_ptr.hbm [resolvable:$true] %s3125_s15 }
  0xab   : > { %s3127_s10 = scalar_lea.hbm %s3126_s15, 1  ;;  %s3132_s25 = scalar_lea.hbm %s3507_s21, 1 }
  0xac   : > { %p3128_p13 = scmp.ne.s32.totalorder %s3126_s15, %s3127_s10  ;;  %p3133_p4 = scmp.lt.s32.totalorder %s3126_s15, %s3507_s21 }
  0xad   : > { %p3134_p6 = scmp.lt.s32.totalorder %s3132_s25, %s3127_s10 }
  0xae   : > { %p3130_p0 = pnand %p3128_p13, %p3605_p7 }
  0xaf   : > { %p3135_p8 = por %p3134_p6, %p3133_p4 }
  0xb0   : > { %p3131_p1 = pneg %p3130_p0 }
  0xb2   : > { %p3136_p9 = pnand %p3135_p8, %p3131_p1 }
  0xb4   : > { %3139 = shalt.err (!%p3136_p9)
}
  0xb5   : > { %2702 = dma.hbm_to_vmem [thread:$0]  (!%p3594_p5), %s3691_s11, 16, %s881_s18, [#allocation8]  }
  0xb6   : > { %s930_s27 = sshll.u32 %s3527_s30, 4  ;;  %s3387_s1 = smov [#allocation12]   ;;  %s3713_s27 = int_to_ptr.hbm [resolvable:$true] %s930_s27 }
  0xb7   : > { %s906_s2 = sshll.u32 %s3387_s1, 4  ;;  %s3155_s16 = sshra.s32 %s3702_s0, 4  ;;  %s907_s2 = int_to_ptr.vmem [resolvable:$true] %s906_s2  ;;  %s3156_s16 = int_to_ptr.hbm [resolvable:$true] %s3155_s16 }
  0xb8   : > { %s3157_s22 = scalar_lea.hbm %s3156_s16, 1  ;;  %s3162_s15 = scalar_lea.hbm %s3517_s24, 1 }
  0xb9   : > { %p3158_p10 = scmp.ne.s32.totalorder %s3156_s16, %s3157_s22  ;;  %p3163_p13 = scmp.lt.s32.totalorder %s3156_s16, %s3517_s24 }
  0xba   : > { %p3164_p0 = scmp.lt.s32.totalorder %s3162_s15, %s3157_s22 }
  0xbb   : > { %p3160_p11 = pnand %p3158_p10, %p3605_p7 }
  0xbc   : > { %p3165_p1 = por %p3164_p0, %p3163_p13 }
  0xbd   : > { %p3161_p12 = pneg %p3160_p11 }
  0xbf   : > { %p3166_p4 = pnand %p3165_p1, %p3161_p12 }
  0xc1   : > { %3169 = shalt.err (!%p3166_p4)
}
  0xc2   : > { %2708 = dma.hbm_to_vmem [thread:$0]  (!%p3594_p5), %s3702_s0, 16, %s907_s2, [#allocation11]  }
  0xc3   : > { %s3388_s11 = smov [#allocation15]   ;;  %s957_s10 = sshll.u32 %s3542_s8, 4  ;;  %s3724_s10 = int_to_ptr.hbm [resolvable:$true] %s957_s10 }
  0xc4   : > { %s932_s18 = sshll.u32 %s3388_s11, 4  ;;  %s3185_s25 = sshra.s32 %s3713_s27, 4  ;;  %s933_s18 = int_to_ptr.vmem [resolvable:$true] %s932_s18  ;;  %s3186_s25 = int_to_ptr.hbm [resolvable:$true] %s3185_s25 }
  0xc5   : > { %s3187_s1 = scalar_lea.hbm %s3186_s25, 1  ;;  %s3192_s16 = scalar_lea.hbm %s3527_s30, 1 }
  0xc6   : > { %p3188_p6 = scmp.ne.s32.totalorder %s3186_s25, %s3187_s1  ;;  %p3193_p10 = scmp.lt.s32.totalorder %s3186_s25, %s3527_s30 }
  0xc7   : > { %p3194_p11 = scmp.lt.s32.totalorder %s3192_s16, %s3187_s1 }
  0xc8   : > { %p3190_p8 = pnand %p3188_p6, %p3605_p7 }
  0xc9   : > { %p3195_p12 = por %p3194_p11, %p3193_p10 }
  0xca   : > { %p3191_p9 = pneg %p3190_p8 }
  0xcc   : > { %p3196_p13 = pnand %p3195_p12, %p3191_p9 }
  0xce   : > { %3199 = shalt.err (!%p3196_p13)
}
  0xcf   : > { %2714 = dma.hbm_to_vmem [thread:$0]  (!%p3594_p5), %s3713_s27, 16, %s933_s18, [#allocation14]  }
  0xd0   : > { %s981_s0 = sshll.u32 %s3552_s19, 4  ;;  %s3389_s2 = smov [#allocation18]   ;;  %s3735_s0 = int_to_ptr.hbm [resolvable:$true] %s981_s0 }
  0xd1   : > { %s959_s22 = sshll.u32 %s3389_s2, 4  ;;  %s3215_s15 = sshra.s32 %s3724_s10, 4  ;;  %s960_s22 = int_to_ptr.vmem [resolvable:$true] %s959_s22  ;;  %s3216_s15 = int_to_ptr.hbm [resolvable:$true] %s3215_s15 }
  0xd2   : > { %s3217_s11 = scalar_lea.hbm %s3216_s15, 1  ;;  %s3222_s25 = scalar_lea.hbm %s3542_s8, 1 }
  0xd3   : > { %p3218_p0 = scmp.ne.s32.totalorder %s3216_s15, %s3217_s11  ;;  %p3223_p6 = scmp.lt.s32.totalorder %s3216_s15, %s3542_s8 }
  0xd4   : > { %p3224_p8 = scmp.lt.s32.totalorder %s3222_s25, %s3217_s11 }
  0xd5   : > { %p3220_p1 = pnand %p3218_p0, %p3605_p7 }
  0xd6   : > { %p3225_p9 = por %p3224_p8, %p3223_p6 }
  0xd7   : > { %p3221_p4 = pneg %p3220_p1 }
  0xd9   : > { %p3226_p10 = pnand %p3225_p9, %p3221_p4 }
  0xdb   : > { %3229 = shalt.err (!%p3226_p10)
}
  0xdc   : > { %2720 = dma.hbm_to_vmem [thread:$0]  (!%p3594_p5), %s3724_s10, 16, %s960_s22, [#allocation17]  }
  0xdd   : > { %s3390_s27 = smov [#allocation21]   ;;  %s993_s1 = sshll.u32 %s3557_s9, 4  ;;  %s994_s1 = int_to_ptr.hbm [resolvable:$true] %s993_s1 }
  0xde   : > { %s983_s18 = sshll.u32 %s3390_s27, 4  ;;  %s3245_s16 = sshra.s32 %s3735_s0, 4  ;;  %s984_s18 = int_to_ptr.vmem [resolvable:$true] %s983_s18  ;;  %s3246_s16 = int_to_ptr.hbm [resolvable:$true] %s3245_s16 }
  0xdf   : > { %s3247_s2 = scalar_lea.hbm %s3246_s16, 1  ;;  %s3252_s15 = scalar_lea.hbm %s3552_s19, 1 }
  0xe0   : > { %p3248_p11 = scmp.ne.s32.totalorder %s3246_s16, %s3247_s2  ;;  %p3253_p0 = scmp.lt.s32.totalorder %s3246_s16, %s3552_s19 }
  0xe1   : > { %p3254_p1 = scmp.lt.s32.totalorder %s3252_s15, %s3247_s2 }
  0xe2   : > { %p3250_p12 = pnand %p3248_p11, %p3605_p7 }
  0xe3   : > { %p3255_p4 = por %p3254_p1, %p3253_p0 }
  0xe4   : > { %p3251_p13 = pneg %p3250_p12 }
  0xe6   : > { %p3256_p6 = pnand %p3255_p4, %p3251_p13 }
  0xe8   : > { %3259 = shalt.err (!%p3256_p6)
}
  0xe9   : > { %2726 = dma.hbm_to_vmem [thread:$0]  (!%p3594_p5), %s3735_s0, 16, %s984_s18, [#allocation20]  }
  0xea   : > { %s3391_s10 = smov [#allocation22]   ;;  %s3275_s11 = sshra.s32 %s994_s1, 4  ;;  %s3276_s11 = int_to_ptr.hbm [resolvable:$true] %s3275_s11 }
  0xeb   : > { %s995_s22 = sshll.u32 %s3391_s10, 4  ;;  %s3277_s25 = scalar_lea.hbm %s3276_s11, 1  ;;  %s996_s22 = int_to_ptr.vmem [resolvable:$true] %s995_s22 }
  0xec   : > { %p3278_p8 = scmp.ne.s32.totalorder %s3276_s11, %s3277_s25  ;;  %s3282_s27 = scalar_lea.hbm %s3557_s9, 1 }
  0xed   : > { %p3283_p11 = scmp.lt.s32.totalorder %s3276_s11, %s3557_s9  ;;  %p3284_p12 = scmp.lt.s32.totalorder %s3282_s27, %s3277_s25 }
  0xee   : > { %p3280_p9 = pnand %p3278_p8, %p3605_p7 }
  0xef   : > { %p3285_p13 = por %p3284_p12, %p3283_p11 }
  0xf0   : > { %p3281_p10 = pneg %p3280_p9 }
  0xf2   : > { %p3286_p0 = pnand %p3285_p13, %p3281_p10 }
  0xf4   : > { %3289 = shalt.err (!%p3286_p0)
}
  0xf5   : > { %2729 = dma.hbm_to_vmem [thread:$0]  (!%p3594_p5), %s994_s1, 16, %s996_s22, [#allocation23]  }
  0xf6   : > { %1015 = sbr.rel (%p3583_p3) target bundleno = 5000 (0x1388), region = 140 }
  0xfb   : > { %3310 = dma.done.wait (%p2730_p2), [#allocation3], 16  }
  0xfc   : > { %3312 = vsyncadd (%p2730_p2), [#allocation3], 4294967280 }
  0xfd   : > { %3314 = dma.done.wait (%p2730_p2), [#allocation5], 32  }
  0xfe   : > { %3316 = vsyncadd (%p2730_p2), [#allocation5], 4294967264 }
  0xff   : > { %3318 = dma.done.wait (%p2730_p2), [#allocation8], 528  }
 0x100   : > { %3320 = vsyncadd (%p2730_p2), [#allocation8], 4294966768 }
 0x101   : > { %3322 = dma.done.wait (%p2730_p2), [#allocation11], 528  }
 0x102   : > { %3324 = vsyncadd (%p2730_p2), [#allocation11], 4294966768 }
 0x103   : > { %3326 = dma.done.wait (%p2730_p2), [#allocation14], 528  }
 0x104   : > { %3328 = vsyncadd (%p2730_p2), [#allocation14], 4294966768 }
 0x105   : > { %3330 = dma.done.wait (%p2730_p2), [#allocation17], 32  }
 0x106   : > { %3332 = vsyncadd (%p2730_p2), [#allocation17], 4294967264 }
 0x107   : > { %3334 = dma.done.wait (%p2730_p2), [#allocation20], 32  }
 0x108   : > { %3336 = vsyncadd (%p2730_p2), [#allocation20], 4294967264 }
 0x109   : > { %3338 = dma.done.wait (%p2730_p2), [#allocation23], 16  }
 0x10a   : > { %3340 = vsyncadd (%p2730_p2), [#allocation23], 4294967280  ;;  %s4005_s26 = sld [smem:[#allocation36_spill]]  ;;  %p1163_p3 = scmp.lt.s32.totalorder %s3578_s23, 1  ;;  %v1177_v0 = vld [vmem:[%s3422_s13 + $0x8] sm:$0xff]  ;;  %v1176_v1 = vld [vmem:[%s3422_s13] sm:$0xff] }
 0x10b   : > { %s4006_s0 = sld [smem:[#allocation33_spill]]  ;;  %1200 = vmatpush.msra.mxu0 %v1177_v0  ;;  %vm1182_vm0 = vcmask 130048   ;;  %vm1216_vm1 = vcmask 261120   ;;  %s3392_s16 = smov 88   ;;  %vm1248_vm2 = vcmask 64512   ;;  %vm2211_vm13 = vcmask 392192  }
 0x10c   : > { %s4026_s23 = smov (!%p1163_p3, %s3578_s23), 1  ;;  %s4007_s18 = sld [smem:[#allocation32_spill]] }
 0x10d   : > { %s3796_s7 = sshll.u32 %s4026_s23, 3  ;;  %s4008_s1 = sld [smem:[#allocation37_spill]]  ;;  %1201 = vmatpush.msra.mxu0 %v1176_v1 }
 0x10e   : > { %s1166_s28 = scalar_lea.vmem %s3412_s5, %s3796_s7  ;;  %s4009_s23 = sld [smem:[#allocation38_spill]] }
 0x10f   : > { %v1175_v2 = vld [vmem:[%s1166_s28] sm:$0xff]  ;;  %s3393_s2 = smov 96   ;;  %s3394_s15 = smov 120  }
 0x110   : > { %v1211_v3 = vld [vmem:[%s4005_s26 + $0x18] sm:$0xff]  ;;  %2589 = vmatmul.msk.f32.vlgmr.msra.gmra.mxu0 %vm1182_vm0, %v1175_v2  ;;  %v1210_v4 = vld [vmem:[%s4005_s26 + $0x10] sm:$0xff]  ;;  %v1209_v5 = vld [vmem:[%s4005_s26 + $0x8] sm:$0xff]  ;;  %s3395_s10 = smov 80   ;;  %s3981_s22 = smov 112  }
 0x111   : > { %1232 = vmatpush.msra.mxu1 %v1211_v3  ;;  %v1208_v6 = vld [vmem:[%s4005_s26] sm:$0xff]  ;;  %s3397_s11 = smov 72   ;;  %s3398_s25 = smov 64  }
 0x112   : > { %v2825_v7 = vld [vmem:[%s4006_s0] ss:$0 sm:$0xff]  ;;  %s3399_s27 = smov 104   ;;  %s3980_s28 = smov 48  }
 0x113   : > { %1233 = vmatpush.msra.mxu1 %v1210_v4  ;;  %v1206_v9 = vld [vmem:[%s4007_s18] sm:$0xff]  ;;  %s3979_s0 = smov 56   ;;  %s3978_s18 = smov 40  }
 0x114   : > { %v2826_v12 = vld [vmem:[%s4008_s1] ss:$0 sm:$0xff]  ;;  %v1241_v3 = vld [vmem:[%s4009_s23 + $0x8] sm:$0xff]  ;;  %s4010_s1 = sld [smem:[#allocation39_spill]] }
 0x115   : > { %1234 = vmatpush.msra.mxu1 %v1209_v5  ;;  %v1240_v16 = vld [vmem:[%s4009_s23] sm:$0xff] }
 0x117   : > { %1235 = vmatpush.msra.mxu1 %v1208_v6 }
 0x119   : > { %1417 = vmatpush.msrb.mxu1 %v1240_v16 }
 0x18d   : > { %v1203_v8 = vpop.f32.mrf.mxu0 }
 0x18e   : > { %v1204_v10 = vadd.f32 %v2825_v7, %v1203_v8  ;;  %v1242_v7 = vld [vmem:[%s4009_s23 + $0x10] sm:$0xff] }
 0x190   : > { %v3808_v11 = vadd.f32 %v1206_v9, %v1204_v10  ;;  %v1243_v10 = vld [vmem:[%s4009_s23 + $0x18] sm:$0xff] }
 0x192   : > { %2590 = vmatmul.msk.f32.vlgmr.msra.gmra.mxu1 %vm1216_vm1, %v3808_v11 }
 0x20f   : > { %v1237_v13 = vpop.f32.mrf.mxu1 }
 0x210   : > { %v3813_v14 = vadd.f32 %v2826_v12, %v1237_v13 }
 0x212   : > { %1313 = vrot.lane.b32.xlu2 %v3813_v14, %s3392_s16  ;;  %1246 = vrot.lane.b32.xlu0 %v3813_v14, %s3393_s2  ;;  %v1244_v15 = vmul.f32 0.35355338, %v3813_v14 }
 0x21a   : > { %1311 = vrot.lane.b32.xlu2 %v1244_v15, %s3394_s15 }
 0x222   : > { %1424 = vrot.lane.b32.xlu2 %v3813_v14, %s3395_s10 }
 0x22a   : > { %1422 = vrot.lane.b32.xlu2 %v1244_v15, %s3981_s22  ;;  %s4015_s22 = sld [smem:[#allocation43_spill]] }
 0x232   : > { %1513 = vrot.lane.b32.xlu2 %v3813_v14, %s3397_s11 }
 0x26c   : > { %v1314_v17 = vpop.permute.xlu2 %1313 }
 0x274   : > { %v1312_v18 = vpop.permute.xlu2 %1311 }
 0x27c   : > { %v1425_v19 = vpop.permute.xlu2 %1424 }
 0x284   : > { %v1247_v20 = vpop.permute.xlu0 %1246  ;;  %v1423_v21 = vpop.permute.xlu2 %1422 }
 0x285   : > { %2591 = vmatpush.xpose.msk.msra.mxu2 %vm1248_vm2, %v1247_v20 }
 0x288   : > { %2592 = vmatmul.msk.f32.vlgmr.msra.gmra.mxu2 %vm1248_vm2, %v1244_v15 }
 0x289   : > { %1394 = vmatpush.msrb.mxu2 %v1241_v3 }
 0x28b   : > { %1505 = vmatpush.msra.mxu2 %v1242_v7  ;;  %v1744_v7 = vld [vmem:[#allocation7 + $0x18] sm:$0xff] }
 0x28c   : > { %v1514_v22 = vpop.permute.xlu2 %1513 }
 0x28d   : > { %2603 = vmatpush.xpose.msk.msra.mxu1 %vm1248_vm2, %v1514_v22 }
 0x30b   : > { %v1271_v23 = vpop.f32.mrf.mxu2 }
 0x30c   : > { %v1274_v24 = vsel %vm1248_vm2, %v1271_v23, -inf }
 0x30d   : > { %1275 = vmax.xlane.f32.xlu0 %v1274_v24 }
 0x380   : > { %v1276_v25 = vpop.xlane.xlu0 %1275 }
 0x381   : > { %v1277_v26 = vsub.f32 %v1271_v23, %v1276_v25  ;;  %v3403_v23 = vmov 32.0  }
 0x383   : > { %v1278_v27 = vmul.f32 1.442695, %v1277_v26 }
 0x385   : > { %2843 = vpow2.f32 %v1278_v27 }
 0x38b   : > { %v2844_v28 = vpop.eup %2843 }
 0x38c   : > { %v1280_v29 = vsel %vm1248_vm2, %v2844_v28, 0.0 }
 0x38d   : > { %1281 = vadd.xlane.f32.xlu1 %v1280_v29 }
 0x3a6   : > { %1285 = vrot.lane.b32.xlu1 %v3813_v14, %s3398_s25 }
 0x3ae   : > { %1511 = vrot.lane.b32.xlu1 %v1244_v15, %s3399_s27 }
 0x400   : > { %v1282_v30 = vpop.xlane.xlu1 %1281 }
 0x401   : > { %2845 = vrcp.f32 %v1282_v30 }
 0x407   : > { %v2846_v31 = vpop.eup %2845 }
 0x408   : > { %v1284_v33 = vmul.f32 %v2846_v31, %v2844_v28 }
 0x418   : > { %v1286_v32 = vpop.permute.xlu1 %1285 }
 0x419   : > { %1306 = vmatpush.msra.mxu3 %v1286_v32 }
 0x41a   : > { %2593 = vmatmul.msk.f32.vlgmr.msra.gmra.mxu3 %vm1248_vm2, %v1284_v33 }
 0x41b   : > { %2594 = vmatpush.xpose.msk.msrb.mxu3 %vm1248_vm2, %v1314_v17  ;;  %v2827_v17 = vld [vmem:[%s4010_s1] ss:$0 sm:$0xff]  ;;  %s4012_s1 = sld [smem:[#allocation42_spill]] }
 0x41f   : > { %2599 = vmatpush.xpose.msk.msra.mxu3 %vm1248_vm2, %v1425_v19 }
 0x420   : > { %v1512_v35 = vpop.permute.xlu1 %1511 }
 0x422   : > { %2595 = vmatmul.msk.f32.vlgmr.msrb.gmra.mxu3 %vm1248_vm2, %v1312_v18 }
 0x42a   : > { %2600 = vmatmul.msk.f32.vlgmr.msra.gmra.mxu3 %vm1248_vm2, %v1423_v21 }
 0x49d   : > { %v1308_v34 = vpop.f32.mrf.mxu3 }
 0x49e   : > { %2598 = vmatmul.msk.f32.vlgmr.msrb.gmra.mxu1 %vm1248_vm2, %v1308_v34 }
 0x4a5   : > { %v1336_v36 = vpop.f32.mrf.mxu3 }
 0x4a6   : > { %2604 = vmatmul.msk.f32.vlgmr.msra.gmra.mxu1 %vm1248_vm2, %v1512_v35  ;;  %v1339_v37 = vsel %vm1248_vm2, %v1336_v36, -inf }
 0x4a7   : > { %1340 = vmax.xlane.f32.xlu2 %v1339_v37 }
 0x4ad   : > { %v1447_v38 = vpop.f32.mrf.mxu3 }
 0x4ae   : > { %v1450_v39 = vsel %vm1248_vm2, %v1447_v38, -inf }
 0x4af   : > { %1451 = vmax.xlane.f32.xlu1 %v1450_v39 }
 0x4c8   : > { %1461 = vrot.lane.b32.xlu1 %v3813_v14, %s3980_s28  ;;  %s4014_s28 = sld [smem:[#allocation41_spill]] }
 0x51a   : > { %v1341_v40 = vpop.xlane.xlu2 %1340 }
 0x51b   : > { %v1342_v41 = vsub.f32 %v1336_v36, %v1341_v40  ;;  %v1419_v42 = vpop.f32.mrf.mxu1 }
 0x51d   : > { %v1343_v43 = vmul.f32 1.442695, %v1342_v41 }
 0x51f   : > { %2847 = vpow2.f32 %v1343_v43 }
 0x522   : > { %v1452_v44 = vpop.xlane.xlu1 %1451 }
 0x523   : > { %v1453_v45 = vsub.f32 %v1447_v38, %v1452_v44  ;;  %v1536_v46 = vpop.f32.mrf.mxu1  ;;  %v1680_v38 = vld [vmem:[%s4012_s1 + $0x18] sm:$0xff] }
 0x524   : > { %v1539_v47 = vsel %vm1248_vm2, %v1536_v46, -inf  ;;  %1700 = vmatpush.msrb.mxu1 %v1680_v38 }
 0x525   : > { %1540 = vmax.xlane.f32.xlu0 %v1539_v47  ;;  %v1454_v48 = vmul.f32 1.442695, %v1453_v45  ;;  %v2848_v49 = vpop.eup %2847 }
 0x526   : > { %v1345_v50 = vsel %vm1248_vm2, %v2848_v49, 0.0 }
 0x527   : > { %2849 = vpow2.f32 %v1454_v48 }
 0x52d   : > { %1346 = vadd.xlane.f32.xlu0 %v1345_v50  ;;  %v2850_v51 = vpop.eup %2849 }
 0x52e   : > { %v1456_v52 = vsel %vm1248_vm2, %v2850_v51, 0.0 }
 0x535   : > { %1457 = vadd.xlane.f32.xlu0 %v1456_v52 }
 0x53a   : > { %v1462_v63 = vpop.permute.xlu1 %1461 }
 0x549   : > { %1350 = vrot.lane.b32.xlu0 %v3813_v14, %s3979_s0  ;;  %s4013_s0 = sld [smem:[#allocation44_spill]] }
 0x54f   : > { %v2828_v48 = vld [vmem:[%s4013_s0] ss:$0 sm:$0xff]  ;;  %s1174_s0 = scalar_lea.vmem %s3567_s29, %s3796_s7 }
 0x598   : > { %v1541_v53 = vpop.xlane.xlu0 %1540 }
 0x599   : > { %v1542_v54 = vsub.f32 %v1536_v46, %v1541_v53 }
 0x59b   : > { %v1543_v55 = vmul.f32 1.442695, %v1542_v54  ;;  %v1679_v54 = vld [vmem:[%s4012_s1 + $0x10] sm:$0xff] }
 0x59c   : > { %1701 = vmatpush.msrb.mxu1 %v1679_v54 }
 0x59d   : > { %2851 = vpow2.f32 %v1543_v55  ;;  %v1678_v55 = vld [vmem:[%s4012_s1 + $0x8] sm:$0xff] }
 0x59e   : > { %1702 = vmatpush.msrb.mxu1 %v1678_v55 }
 0x5a0   : > { %v1347_v58 = vpop.xlane.xlu0 %1346 }
 0x5a1   : > { %2853 = vrcp.f32 %v1347_v58 }
 0x5a3   : > { %v2852_v56 = vpop.eup %2851 }
 0x5a4   : > { %v1545_v57 = vsel %vm1248_vm2, %v2852_v56, 0.0 }
 0x5a5   : > { %1546 = vadd.xlane.f32.xlu2 %v1545_v57  ;;  %v2830_v57 = vld [vmem:[%s4014_s28] ss:$0 sm:$0xff]  ;;  %s1170_s28 = scalar_lea.vmem %s3562_s17, %s3796_s7 }
 0x5a7   : > { %v2854_v60 = vpop.eup %2853 }
 0x5a8   : > { %v1458_v59 = vpop.xlane.xlu0 %1457  ;;  %v1349_v62 = vmul.f32 %v2854_v60, %v2848_v49 }
 0x5a9   : > { %2855 = vrcp.f32 %v1458_v59 }
 0x5af   : > { %v2856_v0 = vpop.eup %2855 }
 0x5b0   : > { %v1460_v1 = vmul.f32 %v2856_v0, %v2850_v51  ;;  %v2829_v51 = vld [vmem:[#allocation2] ss:$0 sm:$0xff] }
 0x5bb   : > { %v1351_v61 = vpop.permute.xlu0 %1350 }
 0x5bc   : > { %1371 = vmatpush.msrb.mxu0 %v1351_v61  ;;  %v2831_v61 = vld [vmem:[%s4015_s22] ss:$0 sm:$0xff]  ;;  %s4020_s22 = sld [smem:[#allocation47_spill]] }
 0x5bd   : > { %1550 = vrot.lane.b32.xlu2 %v3813_v14, %s3978_s18  ;;  %2596 = vmatmul.msk.f32.vlgmr.msrb.gmra.mxu0 %vm1248_vm2, %v1349_v62  ;;  %s4011_s18 = sld [smem:[#allocation40_spill]] }
 0x5be   : > { %1482 = vmatpush.msra.mxu0 %v1462_v63 }
 0x5c0   : > { %1594 = vmatpush.msrb.mxu0 %v1243_v10  ;;  %v1741_v10 = vld [vmem:[#allocation7] sm:$0xff] }
 0x5c3   : > { %v1648_v34 = vld [vmem:[%s4011_s18 + $0x18] sm:$0xff]  ;;  %v1647_v35 = vld [vmem:[%s4011_s18 + $0x10] sm:$0xff]  ;;  %v1646_v36 = vld [vmem:[%s4011_s18 + $0x8] sm:$0xff] }
 0x5c4   : > { %v1645_v37 = vld [vmem:[%s4011_s18] sm:$0xff] }
 0x5c5   : > { %2601 = vmatmul.msk.f32.vlgmr.msra.gmra.mxu0 %vm1248_vm2, %v1460_v1 }
 0x618   : > { %v1547_v2 = vpop.xlane.xlu2 %1546 }
 0x619   : > { %2857 = vrcp.f32 %v1547_v2 }
 0x61a   : > { %2859 = vrcp.f32 %v3403_v23 }
 0x61f   : > { %v2858_v4 = vpop.eup %2857 }
 0x620   : > { %v1549_v5 = vmul.f32 %v2858_v4, %v2852_v56  ;;  %v1551_v6 = vpop.permute.xlu2 %1550  ;;  %v2860_v24 = vpop.eup %2859  ;;  %v1677_v56 = vld [vmem:[%s4012_s1] sm:$0xff] }
 0x621   : > { %1571 = vmatpush.msrb.mxu3 %v1551_v6  ;;  %v1612_v25 = vmul.f32 32.0, %v2860_v24  ;;  %vm1616_vm3 = vweird.f32 %v2860_v24  ;;  %1703 = vmatpush.msrb.mxu1 %v1677_v56 }
 0x622   : > { %2605 = vmatmul.msk.f32.vlgmr.msrb.gmra.mxu3 %vm1248_vm2, %v1549_v5 }
 0x623   : > { %v1613_v26 = vsub.f32 1.0, %v1612_v25  ;;  %1764 = vmatpush.msra.mxu3 %v1744_v7 }
 0x625   : > { %v1614_v27 = vmul.f32 %v2860_v24, %v1613_v26 }
 0x627   : > { %v1615_v28 = vadd.f32 %v2860_v24, %v1614_v27  ;;  %v2834_v27 = vld [vmem:[#allocation9] ss:$0 sm:$0xff] }
 0x629   : > { %v3866_v29 = vsel %vm1616_vm3, %v2860_v24, %v1615_v28  ;;  %v2833_v24 = vld [vmem:[#allocation6] ss:$0 sm:$0xff] }
 0x63a   : > { %v1373_v8 = vpop.f32.mrf.mxu0 }
 0x63b   : > { %2597 = vmatmul.msk.f32.vlgmr.msrb.gmra.mxu2 %vm1248_vm2, %v1373_v8  ;;  %v1743_v8 = vld [vmem:[#allocation7 + $0x10] sm:$0xff] }
 0x63c   : > { %1668 = vmatpush.msrb.mxu2 %v1648_v34  ;;  %1765 = vmatpush.msra.mxu3 %v1743_v8 }
 0x63e   : > { %1669 = vmatpush.msrb.mxu2 %v1647_v35 }
 0x640   : > { %1670 = vmatpush.msrb.mxu2 %v1646_v36 }
 0x642   : > { %v1484_v9 = vpop.f32.mrf.mxu0  ;;  %1671 = vmatpush.msrb.mxu2 %v1645_v37 }
 0x643   : > { %2602 = vmatmul.msk.f32.vlgmr.msra.gmra.mxu2 %vm1248_vm2, %v1484_v9  ;;  %v1742_v9 = vld [vmem:[#allocation7 + $0x8] sm:$0xff] }
 0x644   : > { %1766 = vmatpush.msra.mxu3 %v1742_v9 }
 0x646   : > { %1767 = vmatpush.msra.mxu3 %v1741_v10 }
 0x6a5   : > { %v1573_v12 = vpop.f32.mrf.mxu3 }
 0x6a6   : > { %2606 = vmatmul.msk.f32.vlgmr.msrb.gmra.mxu0 %vm1248_vm2, %v1573_v12 }
 0x6be   : > { %v1396_v13 = vpop.f32.mrf.mxu2 }
 0x6bf   : > { %v1420_v15 = vadd.f32 %v1419_v42, %v1396_v13 }
 0x6c6   : > { %v1507_v14 = vpop.f32.mrf.mxu2 }
 0x6c7   : > { %v1510_v16 = vadd.f32 %v1507_v14, %v1420_v15 }
 0x723   : > { %v1596_v18 = vpop.f32.mrf.mxu0 }
 0x724   : > { %v1599_v19 = vadd.f32 %v1596_v18, %v1510_v16 }
 0x726   : > { %v1604_v20 = vadd.f32 %v2827_v17, %v1599_v19 }
 0x728   : > { %v1605_v21 = vadd.f32 %v1604_v20, %v3808_v11 }
 0x72a   : > { %v1608_v22 = vsel %vm1216_vm1, %v1605_v21, 0.0 }
 0x72b   : > { %1609 = vadd.xlane.f32.xlu0 %v1608_v22 }
 0x79e   : > { %v1610_v30 = vpop.xlane.xlu0 %1609 }
 0x79f   : > { %v1618_v11 = vmul.f32 %v3866_v29, %v1610_v30 }
 0x7a1   : > { %v1619_v31 = vsub.f32 %v1605_v21, %v1618_v11  ;;  %v2832_v21 = vld [vmem:[#allocation4] ss:$0 sm:$0xff] }
 0x7a3   : > { %v1620_v32 = vmul.f32 %v1619_v31, %v1619_v31 }
 0x7a5   : > { %v1621_v33 = vsel %vm1216_vm1, %v1620_v32, 0.0 }
 0x7a6   : > { %1622 = vadd.xlane.f32.xlu1 %v1621_v33 }
 0x819   : > { %v1623_v39 = vpop.xlane.xlu1 %1622 }
 0x81a   : > { %v1624_v40 = vmul.f32 %v1623_v39, %v3866_v29 }
 0x81c   : > { %v1625_v41 = vadd.f32 1e-05, %v1624_v40  ;;  %v1772_v40 = vld [vmem:[#allocation10] sm:$0xff] }
 0x81e   : > { %2861 = vrsqrt.f32 %v1625_v41  ;;  %vm1632_vm5 = vweird.f32 %v1625_v41 }
 0x824   : > { %v2862_v42 = vpop.eup %2861 }
 0x825   : > { %v1627_v43 = vmul.f32 %v2862_v42, %v1625_v41  ;;  %vm1633_vm4 = vweird.f32 %v2862_v42 }
 0x826   : > { %vm1634_vm6 = vmor %vm1632_vm5, %vm1633_vm4 }
 0x827   : > { %v1628_v44 = vmul.f32 %v2862_v42, %v1627_v43 }
 0x829   : > { %v1629_v45 = vmul.f32 0.5, %v1628_v44 }
 0x82b   : > { %v1630_v46 = vsub.f32 1.5, %v1629_v45 }
 0x82d   : > { %v1631_v47 = vmul.f32 %v2862_v42, %v1630_v46 }
 0x82f   : > { %v1635_v49 = vsel %vm1634_vm6, %v2862_v42, %v1631_v47 }
 0x830   : > { %v1636_v50 = vmul.f32 %v1635_v49, %v1619_v31 }
 0x832   : > { %v1640_v52 = vmul.f32 %v2828_v48, %v1636_v50 }
 0x834   : > { %v1644_v53 = vadd.f32 %v2829_v51, %v1640_v52 }
 0x836   : > { %2607 = vmatmul.msk.f32.vlgmr.msrb.gmra.mxu2 %vm1216_vm1, %v1644_v53 }
 0x8b9   : > { %v1673_v58 = vpop.f32.mrf.mxu2 }
 0x8ba   : > { %v1674_v59 = vadd.f32 %v2830_v57, %v1673_v58 }
 0x8bc   : > { %v1676_v60 = vmax.f32 %v1674_v59, 0.0 }
 0x8be   : > { %2608 = vmatmul.msk.f32.vlgmr.msrb.gmra.mxu1 %vm1216_vm1, %v1676_v60 }
 0x93b   : > { %v1705_v62 = vpop.f32.mrf.mxu1 }
 0x93c   : > { %v1706_v63 = vadd.f32 %v2831_v61, %v1705_v62 }
 0x93e   : > { %v1708_v0 = vadd.f32 %v1706_v63, %v1644_v53 }
 0x940   : > { %v1711_v1 = vsel %vm1216_vm1, %v1708_v0, 0.0 }
 0x941   : > { %1712 = vadd.xlane.f32.xlu2 %v1711_v1 }
 0x9b4   : > { %v1713_v2 = vpop.xlane.xlu2 %1712 }
 0x9b5   : > { %v1714_v3 = vmul.f32 %v1713_v2, %v3866_v29 }
 0x9b7   : > { %v1715_v4 = vsub.f32 %v1708_v0, %v1714_v3 }
 0x9b9   : > { %v1716_v5 = vmul.f32 %v1715_v4, %v1715_v4 }
 0x9bb   : > { %v1717_v6 = vsel %vm1216_vm1, %v1716_v5, 0.0 }
 0x9bc   : > { %1718 = vadd.xlane.f32.xlu0 %v1717_v6 }
 0xa2f   : > { %v1719_v12 = vpop.xlane.xlu0 %1718 }
 0xa30   : > { %v1720_v13 = vmul.f32 %v1719_v12, %v3866_v29 }
 0xa32   : > { %v1721_v14 = vadd.f32 1e-05, %v1720_v13 }
 0xa34   : > { %2863 = vrsqrt.f32 %v1721_v14  ;;  %vm1728_vm8 = vweird.f32 %v1721_v14 }
 0xa3a   : > { %v2864_v15 = vpop.eup %2863 }
 0xa3b   : > { %v1723_v16 = vmul.f32 %v2864_v15, %v1721_v14  ;;  %vm1729_vm7 = vweird.f32 %v2864_v15 }
 0xa3c   : > { %vm1730_vm9 = vmor %vm1728_vm8, %vm1729_vm7 }
 0xa3d   : > { %v1724_v17 = vmul.f32 %v2864_v15, %v1723_v16 }
 0xa3f   : > { %v1725_v18 = vmul.f32 0.5, %v1724_v17 }
 0xa41   : > { %v1726_v19 = vsub.f32 1.5, %v1725_v18  ;;  %v1773_v18 = vld [vmem:[#allocation10 + $0x8] sm:$0xff] }
 0xa43   : > { %v1727_v20 = vmul.f32 %v2864_v15, %v1726_v19  ;;  %v1774_v19 = vld [vmem:[#allocation10 + $0x10] sm:$0xff] }
 0xa45   : > { %v1731_v22 = vsel %vm1730_vm9, %v2864_v15, %v1727_v20 }
 0xa46   : > { %v1732_v23 = vmul.f32 %v1731_v22, %v1715_v4 }
 0xa48   : > { %v1736_v25 = vmul.f32 %v2832_v21, %v1732_v23 }
 0xa4a   : > { %v3888_v26 = vadd.f32 %v2833_v24, %v1736_v25 }
 0xa4c   : > { %2609 = vmatmul.msk.f32.vlgmr.msra.gmra.mxu3 %vm1216_vm1, %v3888_v26 }
 0xacf   : > { %v1769_v28 = vpop.f32.mrf.mxu3 }
 0xad0   : > { %v3892_v30 = vadd.f32 %v2834_v27, %v1769_v28  ;;  %v1775_v27 = vld [vmem:[#allocation10 + $0x18] sm:$0xff] }
 0xad2   : > { %1778 = vrot.lane.b32.xlu0 %v3892_v30, %s3393_s2  ;;  %v1776_v11 = vmul.f32 0.35355338, %v3892_v30  ;;  %s4016_s2 = smov 112  }
 0xada   : > { %1842 = vrot.lane.b32.xlu0 %v1776_v11, %s3394_s15  ;;  %s4018_s15 = smov 56  }
 0xae2   : > { %2044 = vrot.lane.b32.xlu0 %v3892_v30, %s3397_s11  ;;  %s4021_s11 = smov %s4020_s22 }
 0xaea   : > { %2042 = vrot.lane.b32.xlu0 %v1776_v11, %s3399_s27  ;;  %s4023_s27 = sld [smem:[#allocation35_spill]] }
 0xb44   : > { %v1779_v31 = vpop.permute.xlu0 %1778 }
 0xb45   : > { %2610 = vmatpush.xpose.msk.msra.mxu0 %vm1248_vm2, %v1779_v31 }
 0xb48   : > { %2611 = vmatmul.msk.f32.vlgmr.msra.gmra.mxu0 %vm1248_vm2, %v1776_v11 }
 0xb49   : > { %1925 = vmatpush.msrb.mxu0 %v1773_v18 }
 0xb4b   : > { %2036 = vmatpush.msra.mxu0 %v1774_v19 }
 0xb4c   : > { %v1843_v41 = vpop.permute.xlu0 %1842 }
 0xb54   : > { %v2045_v47 = vpop.permute.xlu0 %2044 }
 0xb5c   : > { %v2043_v54 = vpop.permute.xlu0 %2042 }
 0xbc5   : > { %v1802_v32 = vpop.f32.mrf.mxu0 }
 0xbc6   : > { %v1805_v33 = vsel %vm1248_vm2, %v1802_v32, -inf }
 0xbc7   : > { %1806 = vmax.xlane.f32.xlu1 %v1805_v33  ;;  %v2835_v33 = vld [vmem:[#allocation12] ss:$0 sm:$0xff] }
 0xbe0   : > { %1816 = vrot.lane.b32.xlu1 %v3892_v30, %s3398_s25  ;;  %s4022_s25 = sld [smem:[#allocation34_spill]] }
 0xbe6   : > { %v2272_v19 = vld [vmem:[%s4022_s25 + $0x18] sm:$0xff] }
 0xbe8   : > { %1955 = vrot.lane.b32.xlu1 %v3892_v30, %s3395_s10  ;;  %s4019_s10 = smov 40  }
 0xc3a   : > { %v1807_v34 = vpop.xlane.xlu1 %1806 }
 0xc3b   : > { %v1808_v35 = vsub.f32 %v1802_v32, %v1807_v34 }
 0xc3d   : > { %v1809_v36 = vmul.f32 1.442695, %v1808_v35 }
 0xc3f   : > { %2865 = vpow2.f32 %v1809_v36 }
 0xc45   : > { %v2866_v37 = vpop.eup %2865 }
 0xc46   : > { %v1811_v38 = vsel %vm1248_vm2, %v2866_v37, 0.0 }
 0xc47   : > { %1812 = vadd.xlane.f32.xlu2 %v1811_v38 }
 0xc52   : > { %v1817_v39 = vpop.permute.xlu1 %1816 }
 0xc53   : > { %1837 = vmatpush.msra.mxu2 %v1817_v39 }
 0xc55   : > { %1948 = vmatpush.msrb.mxu2 %v1772_v40 }
 0xc5a   : > { %v1956_v46 = vpop.permute.xlu1 %1955 }
 0xc5f   : > { %1844 = vrot.lane.b32.xlu2 %v3892_v30, %s3392_s16  ;;  %s4017_s16 = smov 48  }
 0xc67   : > { %1953 = vrot.lane.b32.xlu2 %v1776_v11, %s4016_s2 }
 0xcba   : > { %v1813_v42 = vpop.xlane.xlu2 %1812 }
 0xcbb   : > { %2867 = vrcp.f32 %v1813_v42 }
 0xcc1   : > { %v2868_v43 = vpop.eup %2867 }
 0xcc2   : > { %v1815_v44 = vmul.f32 %v2868_v43, %v2866_v37  ;;  %v1845_v45 = vpop.permute.xlu2 %1844 }
 0xcc3   : > { %2613 = vmatpush.xpose.msk.msra.mxu1 %vm1248_vm2, %v1845_v45  ;;  %v2171_v45 = vld [vmem:[#allocation13 + $0x10] sm:$0xff] }
 0xcc4   : > { %2612 = vmatmul.msk.f32.vlgmr.msra.gmra.mxu2 %vm1248_vm2, %v1815_v44  ;;  %v2172_v44 = vld [vmem:[#allocation13 + $0x18] sm:$0xff] }
 0xcc5   : > { %2622 = vmatpush.xpose.msk.msra.mxu2 %vm1248_vm2, %v2045_v47  ;;  %v2206_v47 = vld [vmem:[%s4020_s22 + $0x28] sm:$0xff] }
 0xcc6   : > { %2614 = vmatmul.msk.f32.vlgmr.msra.gmra.mxu1 %vm1248_vm2, %v1843_v41 }
 0xcc7   : > { %2618 = vmatpush.xpose.msk.msrb.mxu1 %vm1248_vm2, %v1956_v46  ;;  %v2170_v46 = vld [vmem:[#allocation13 + $0x8] sm:$0xff] }
 0xcca   : > { %v1954_v48 = vpop.permute.xlu2 %1953 }
 0xcce   : > { %2619 = vmatmul.msk.f32.vlgmr.msrb.gmra.mxu1 %vm1248_vm2, %v1954_v48  ;;  %v2205_v48 = vld [vmem:[%s4021_s11 + $0x20] sm:$0xff] }
 0xd43   : > { %v1867_v49 = vpop.f32.mrf.mxu1 }
 0xd44   : > { %v1870_v50 = vsel %vm1248_vm2, %v1867_v49, -inf }
 0xd45   : > { %1871 = vmax.xlane.f32.xlu0 %v1870_v50 }
 0xd47   : > { %v1839_v51 = vpop.f32.mrf.mxu2 }
 0xd48   : > { %2617 = vmatmul.msk.f32.vlgmr.msrb.gmra.mxu2 %vm1248_vm2, %v1839_v51 }
 0xd49   : > { %2225 = vmatpush.msrb.mxu2 %v2206_v47 }
 0xd4b   : > { %v1978_v52 = vpop.f32.mrf.mxu1  ;;  %2226 = vmatpush.msrb.mxu2 %v2205_v48 }
 0xd4c   : > { %v1981_v53 = vsel %vm1248_vm2, %v1978_v52, -inf }
 0xd4d   : > { %1982 = vmax.xlane.f32.xlu1 %v1981_v53 }
 0xd50   : > { %2623 = vmatmul.msk.f32.vlgmr.msra.gmra.mxu2 %vm1248_vm2, %v2043_v54 }
 0xdb8   : > { %v1872_v55 = vpop.xlane.xlu0 %1871 }
 0xdb9   : > { %v1873_v56 = vsub.f32 %v1867_v49, %v1872_v55  ;;  %v2204_v49 = vld [vmem:[%s4021_s11 + $0x18] sm:$0xff] }
 0xdba   : > { %2227 = vmatpush.msrb.mxu2 %v2204_v49 }
 0xdbb   : > { %v1874_v57 = vmul.f32 1.442695, %v1873_v56 }
 0xdbd   : > { %2869 = vpow2.f32 %v1874_v57 }
 0xdc0   : > { %v1983_v58 = vpop.xlane.xlu1 %1982 }
 0xdc1   : > { %v1984_v59 = vsub.f32 %v1978_v52, %v1983_v58 }
 0xdc3   : > { %v2870_v60 = vpop.eup %2869  ;;  %v1985_v61 = vmul.f32 1.442695, %v1984_v59  ;;  %v2836_v59 = vld [vmem:[#allocation18] ss:$0 sm:$0xff] }
 0xdc4   : > { %v1876_v62 = vsel %vm1248_vm2, %v2870_v60, 0.0 }
 0xdc5   : > { %2871 = vpow2.f32 %v1985_v61  ;;  %1877 = vadd.xlane.f32.xlu0 %v1876_v62  ;;  %v2837_v62 = vld [vmem:[#allocation19] ss:$0 sm:$0xff] }
 0xdcb   : > { %v2872_v63 = vpop.eup %2871  ;;  %v1950_v0 = vpop.f32.mrf.mxu2 }
 0xdcc   : > { %v1987_v1 = vsel %vm1248_vm2, %v2872_v63, 0.0 }
 0xdcd   : > { %1988 = vadd.xlane.f32.xlu1 %v1987_v1  ;;  %v2203_v1 = vld [vmem:[%s4021_s11 + $0x10] sm:$0xff] }
 0xdce   : > { %2228 = vmatpush.msrb.mxu2 %v2203_v1 }
 0xdd3   : > { %v2067_v2 = vpop.f32.mrf.mxu2 }
 0xdd4   : > { %v2070_v3 = vsel %vm1248_vm2, %v2067_v2, -inf }
 0xdd5   : > { %2071 = vmax.xlane.f32.xlu2 %v2070_v3  ;;  %v2201_v3 = vld [vmem:[%s4021_s11] sm:$0xff] }
 0xde6   : > { %1992 = vrot.lane.b32.xlu1 %v3892_v30, %s4017_s16 }
 0xded   : > { %1881 = vrot.lane.b32.xlu2 %v3892_v30, %s4018_s15 }
 0xe38   : > { %v1878_v4 = vpop.xlane.xlu0 %1877 }
 0xe39   : > { %2873 = vrcp.f32 %v1878_v4  ;;  %v2838_v4 = vld [vmem:[#allocation15] ss:$0 sm:$0xff] }
 0xe3f   : > { %v2874_v9 = vpop.eup %2873 }
 0xe40   : > { %v1989_v8 = vpop.xlane.xlu1 %1988  ;;  %v1880_v10 = vmul.f32 %v2874_v9, %v2870_v60 }
 0xe48   : > { %v2072_v5 = vpop.xlane.xlu2 %2071 }
 0xe49   : > { %v2073_v6 = vsub.f32 %v2067_v2, %v2072_v5  ;;  %v2202_v2 = vld [vmem:[%s4021_s11 + $0x8] sm:$0xff] }
 0xe4a   : > { %2229 = vmatpush.msrb.mxu2 %v2202_v2 }
 0xe4b   : > { %v2074_v7 = vmul.f32 1.442695, %v2073_v6 }
 0xe4c   : > { %2230 = vmatpush.msrb.mxu2 %v2201_v3 }
 0xe4d   : > { %2875 = vpow2.f32 %v2074_v7 }
 0xe4e   : > { %2877 = vrcp.f32 %v1989_v8  ;;  %v2839_v8 = vld [vmem:[#allocation16] ss:$0 sm:$0xff] }
 0xe50   : > { %v1882_v12 = vpop.permute.xlu2 %1881 }
 0xe51   : > { %1902 = vmatpush.msrb.mxu3 %v1882_v12 }
 0xe52   : > { %2615 = vmatmul.msk.f32.vlgmr.msrb.gmra.mxu3 %vm1248_vm2, %v1880_v10 }
 0xe53   : > { %v2876_v13 = vpop.eup %2875 }
 0xe54   : > { %v2076_v14 = vsel %vm1248_vm2, %v2876_v13, 0.0  ;;  %v2878_v15 = vpop.eup %2877 }
 0xe55   : > { %2077 = vadd.xlane.f32.xlu0 %v2076_v14  ;;  %v1991_v16 = vmul.f32 %v2878_v15, %v2872_v63 }
 0xe58   : > { %v1993_v17 = vpop.permute.xlu1 %1992 }
 0xe59   : > { %2013 = vmatpush.msra.mxu3 %v1993_v17 }
 0xe5a   : > { %2620 = vmatmul.msk.f32.vlgmr.msra.gmra.mxu3 %vm1248_vm2, %v1991_v16 }
 0xe5b   : > { %2125 = vmatpush.msrb.mxu3 %v1775_v27 }
 0xe69   : > { %2081 = vrot.lane.b32.xlu0 %v3892_v30, %s4019_s10 }
 0xec8   : > { %v2078_v20 = vpop.xlane.xlu0 %2077 }
 0xec9   : > { %2879 = vrcp.f32 %v2078_v20  ;;  %v2271_v20 = vld [vmem:[%s4022_s25 + $0x10] sm:$0xff] }
 0xecf   : > { %v2880_v22 = vpop.eup %2879 }
 0xed0   : > { %v2080_v23 = vmul.f32 %v2880_v22, %v2876_v13  ;;  %v2269_v22 = vld [vmem:[%s4022_s25] sm:$0xff] }
 0xed5   : > { %v1904_v21 = vpop.f32.mrf.mxu3 }
 0xed6   : > { %2616 = vmatmul.msk.f32.vlgmr.msrb.gmra.mxu0 %vm1248_vm2, %v1904_v21  ;;  %v2270_v21 = vld [vmem:[%s4022_s25 + $0x8] sm:$0xff] }
 0xed7   : > { %2192 = vmatpush.msrb.mxu0 %v2172_v44 }
 0xed9   : > { %2193 = vmatpush.msrb.mxu0 %v2171_v45 }
 0xedb   : > { %v2082_v24 = vpop.permute.xlu0 %2081  ;;  %2194 = vmatpush.msrb.mxu0 %v2170_v46 }
 0xedc   : > { %2102 = vmatpush.msra.mxu1 %v2082_v24 }
 0xedd   : > { %v2015_v25 = vpop.f32.mrf.mxu3  ;;  %2624 = vmatmul.msk.f32.vlgmr.msra.gmra.mxu1 %vm1248_vm2, %v2080_v23 }
 0xede   : > { %2621 = vmatmul.msk.f32.vlgmr.msra.gmra.mxu0 %vm1248_vm2, %v2015_v25  ;;  %2292 = vmatpush.msrb.mxu1 %v2272_v19 }
 0xee0   : > { %2293 = vmatpush.msrb.mxu1 %v2271_v20 }
 0xee2   : > { %2294 = vmatpush.msrb.mxu1 %v2270_v21 }
 0xee4   : > { %2295 = vmatpush.msrb.mxu1 %v2269_v22 }
 0xf53   : > { %v1927_v30 = vpop.f32.mrf.mxu0 }
 0xf54   : > { %v1951_v31 = vadd.f32 %v1950_v0, %v1927_v30 }
 0xf5a   : > { %v2104_v28 = vpop.f32.mrf.mxu1 }
 0xf5b   : > { %2625 = vmatmul.msk.f32.vlgmr.msrb.gmra.mxu3 %vm1248_vm2, %v2104_v28  ;;  %v2038_v11 = vpop.f32.mrf.mxu0  ;;  %vm2300_vm2 = vcmask 23552  }
 0xf5c   : > { %v2041_v32 = vadd.f32 %v2038_v11, %v1951_v31 }
 0xfde   : > { %v2127_v34 = vpop.f32.mrf.mxu3 }
 0xfdf   : > { %v2130_v35 = vadd.f32 %v2127_v34, %v2041_v32 }
 0xfe1   : > { %v2135_v36 = vadd.f32 %v2835_v33, %v2130_v35  ;;  %v2840_v33 = vld [vmem:[#allocation21] ss:$0 sm:$0xff] }
 0xfe3   : > { %v2136_v37 = vadd.f32 %v2135_v36, %v3888_v26  ;;  %v2169_v26 = vld [vmem:[#allocation13] sm:$0xff] }
 0xfe4   : > { %2195 = vmatpush.msrb.mxu0 %v2169_v26 }
 0xfe5   : > { %v2139_v38 = vsel %vm1216_vm1, %v2136_v37, 0.0 }
 0xfe6   : > { %2140 = vadd.xlane.f32.xlu2 %v2139_v38  ;;  %v2842_v38 = vld [vmem:[%s4023_s27] ss:$0 sm:$0xff] }
0x1059   : > { %v2141_v39 = vpop.xlane.xlu2 %2140 }
0x105a   : > { %v2142_v40 = vmul.f32 %v2141_v39, %v3866_v29 }
0x105c   : > { %v2143_v41 = vsub.f32 %v2136_v37, %v2142_v40 }
0x105e   : > { %v2144_v42 = vmul.f32 %v2143_v41, %v2143_v41 }
0x1060   : > { %v2145_v43 = vsel %vm1216_vm1, %v2144_v42, 0.0 }
0x1061   : > { %2146 = vadd.xlane.f32.xlu0 %v2145_v43 }
0x10d4   : > { %v2147_v50 = vpop.xlane.xlu0 %2146 }
0x10d5   : > { %v2148_v51 = vmul.f32 %v2147_v50, %v3866_v29 }
0x10d7   : > { %v2149_v52 = vadd.f32 1e-05, %v2148_v51 }
0x10d9   : > { %2881 = vrsqrt.f32 %v2149_v52  ;;  %vm2156_vm11 = vweird.f32 %v2149_v52 }
0x10df   : > { %v2882_v53 = vpop.eup %2881 }
0x10e0   : > { %v2151_v54 = vmul.f32 %v2882_v53, %v2149_v52  ;;  %vm2157_vm10 = vweird.f32 %v2882_v53 }
0x10e1   : > { %vm2158_vm12 = vmor %vm2156_vm11, %vm2157_vm10 }
0x10e2   : > { %v2152_v55 = vmul.f32 %v2882_v53, %v2151_v54 }
0x10e4   : > { %v2153_v56 = vmul.f32 0.5, %v2152_v55 }
0x10e6   : > { %v2154_v57 = vsub.f32 1.5, %v2153_v56 }
0x10e8   : > { %v2155_v58 = vmul.f32 %v2882_v53, %v2154_v57 }
0x10ea   : > { %v2159_v60 = vsel %vm2158_vm12, %v2882_v53, %v2155_v58 }
0x10eb   : > { %v2160_v61 = vmul.f32 %v2159_v60, %v2143_v41 }
0x10ed   : > { %v2164_v63 = vmul.f32 %v2836_v59, %v2160_v61 }
0x10ef   : > { %v2168_v0 = vadd.f32 %v2837_v62, %v2164_v63 }
0x10f1   : > { %2626 = vmatmul.msk.f32.vlgmr.msrb.gmra.mxu0 %vm1216_vm1, %v2168_v0 }
0x116e   : > { %v2197_v5 = vpop.f32.mrf.mxu0 }
0x116f   : > { %v2198_v6 = vadd.f32 %v2838_v4, %v2197_v5 }
0x1171   : > { %v2200_v7 = vmax.f32 %v2198_v6, 0.0 }
0x1173   : > { %2627 = vmatmul.msk.f32.vlgmr.msrb.gmra.mxu2 %vm2211_vm13, %v2200_v7 }
0x11f6   : > { %v2232_v9 = vpop.f32.mrf.mxu2 }
0x11f7   : > { %v2233_v10 = vadd.f32 %v2839_v8, %v2232_v9 }
0x11f9   : > { %v2235_v12 = vadd.f32 %v2233_v10, %v2168_v0 }
0x11fb   : > { %v2238_v13 = vsel %vm1216_vm1, %v2235_v12, 0.0 }
0x11fc   : > { %2239 = vadd.xlane.f32.xlu1 %v2238_v13 }
0x126f   : > { %v2240_v14 = vpop.xlane.xlu1 %2239 }
0x1270   : > { %v2241_v15 = vmul.f32 %v2240_v14, %v3866_v29 }
0x1272   : > { %v2242_v16 = vsub.f32 %v2235_v12, %v2241_v15 }
0x1274   : > { %v2243_v17 = vmul.f32 %v2242_v16, %v2242_v16 }
0x1276   : > { %v2244_v18 = vsel %vm1216_vm1, %v2243_v17, 0.0 }
0x1277   : > { %2245 = vadd.xlane.f32.xlu2 %v2244_v18 }
0x12ea   : > { %v2246_v23 = vpop.xlane.xlu2 %2245 }
0x12eb   : > { %v2247_v24 = vmul.f32 %v2246_v23, %v3866_v29  ;;  %v2841_v29 = vld [vmem:[#allocation22] ss:$0 sm:$0xff] }
0x12ed   : > { %v2248_v25 = vadd.f32 1e-05, %v2247_v24 }
0x12ef   : > { %2883 = vrsqrt.f32 %v2248_v25  ;;  %vm2255_vm15 = vweird.f32 %v2248_v25 }
0x12f5   : > { %v2884_v27 = vpop.eup %2883 }
0x12f6   : > { %v2250_v28 = vmul.f32 %v2884_v27, %v2248_v25  ;;  %vm2256_vm14 = vweird.f32 %v2884_v27 }
0x12f7   : > { %vm2257_vm0 = vmor %vm2255_vm15, %vm2256_vm14 }
0x12f8   : > { %v2251_v30 = vmul.f32 %v2884_v27, %v2250_v28 }
0x12fa   : > { %v2252_v11 = vmul.f32 0.5, %v2251_v30 }
0x12fc   : > { %v2253_v31 = vsub.f32 1.5, %v2252_v11 }
0x12fe   : > { %v2254_v32 = vmul.f32 %v2884_v27, %v2253_v31 }
0x1300   : > { %v2258_v34 = vsel %vm2257_vm0, %v2884_v27, %v2254_v32 }
0x1301   : > { %v2259_v35 = vmul.f32 %v2258_v34, %v2242_v16 }
0x1303   : > { %v2263_v36 = vmul.f32 %v2840_v33, %v2259_v35 }
0x1305   : > { %v2267_v37 = vadd.f32 %v2841_v29, %v2263_v36 }
0x1307   : > { %2268 = vst.msk [vmem:[%s1170_s28] sm:$0xff] %vm1216_vm1, %v2267_v37  ;;  %2628 = vmatmul.msk.f32.vlgmr.msrb.gmra.mxu1 %vm1216_vm1, %v2267_v37 }
0x1384   : > { %v2297_v39 = vpop.f32.mrf.mxu1 }
0x1385   : > { %v2298_v40 = vadd.f32 %v2842_v38, %v2297_v39 }
0x1387   : > { %2301 = vst.msk [vmem:[%s1174_s0] sm:$0xff] %vm2300_vm2, %v2298_v40 }
0x1388 PF: > { %s4024_s2 = sld [smem:[#allocation48_spill]] }
0x138e   : > { %s82_s22 = sadd.s32 1, %s4024_s2  }
0x138f   : > { %p79_p2 = scmp.ge.s32.totalorder %s82_s22, 4  }
0x1391   :  { %81 = sbr.rel (!%p79_p2) target bundleno = 57 (0x39), region = 270 }
0x1396   :  { %2335 = vsyncpa [#allocation3], 1 }
0x1397   :  { %2337 = vsyncpa [#allocation3 + $0x1], 1 }
0x1398   :  { %2338 = vsyncpa [#allocation5], 1 }
0x1399   :  { %2339 = vsyncpa [#allocation8], 1 }
0x139a   :  { %2340 = vsyncpa [#allocation11], 1 }
0x139b   :  { %2341 = vsyncpa [#allocation14], 1 }
0x139c   :  { %2342 = vsyncpa [#allocation17], 1 }
0x139d   :  { %2343 = vsyncpa [#allocation20], 1 }
0x139e   :  { %2344 = vsyncpa [#allocation23], 1 }

</bundles_post_ra>
